<compile_context>
chip_gen: v7x
topology: tpu7x:2x2x1
jax: 0.10.0
libtpu: 0.0.40
codegen_flags: <defaults>
</compile_context>

<pallas_src>
import jax
import jax.numpy as jnp
from jax import lax
from jax.experimental import pallas as pl
from jax.experimental.pallas import tpu as pltpu

# ------------- configuration (mirrors StageCS(args, device, template)) -------
HIDDEN = 32               # hidden_size == LM embedding dim
VOCAB = 128               # synthetic LM vocab size
TEMPLATE = (4, 4)         # StageCS1 template
SPELL = sum(TEMPLATE)     # prompt_agent.spell_length
H2 = HIDDEN // 2          # BiLSTM hidden size per direction
NUM_LSTM_LAYERS = 2
GATES = 4 * 2 * H2        # 128-wide interleaved fwd/bwd gate row (one vreg lane width)
PAD_ID, SEP_ID, EOS_ID, UNK_ID = 0, 1, 2, 3
PSEUDO_ID = VOCAB         # '[PROMPT]' special token added on top of the vocab
TOTAL_COLS = VOCAB + SPELL  # columns of the fused [word_emb ; replace] gather table

VMEM_SPEC = pl.BlockSpec(memory_space=pltpu.MemorySpace.VMEM)


# -------------------- BiLSTM weight repacking (host-side, once) --------------
def pack_bilstm(wih, whh, bias):
    """Repack per-(layer, direction) LSTM weights into a lane-dense layout.

    Gate columns are interleaved as
      [ i_f i_b | f_f f_b | g_f g_b | o_f o_b ]   (each block H2 wide, 128 total)
    so both directions run in one recurrence:
      gates(t) = x_fwd(t) @ Wih_f  +  x_bwd(t) @ Wih_b  +  [h_f|h_b] @ Whh_blockdiag + b
    """
    nl = wih.shape[0]
    wih_f = jnp.zeros((nl, HIDDEN, GATES), jnp.float32)
    wih_b = jnp.zeros((nl, HIDDEN, GATES), jnp.float32)
    whh_p = jnp.zeros((nl, 2 * H2, GATES), jnp.float32)
    b_p = jnp.zeros((nl, 1, GATES), jnp.float32)
    for l in range(nl):
        for d in range(2):                       # 0 = forward, 1 = backward
            for g in range(4):                   # gate order i, f, g, o
                dst = slice(g * 2 * H2 + d * H2, g * 2 * H2 + (d + 1) * H2)
                src = slice(g * H2, (g + 1) * H2)
                if d == 0:
                    wih_f = wih_f.at[l, :, dst].set(wih[l, d, :, src])
                else:
                    wih_b = wih_b.at[l, :, dst].set(wih[l, d, :, src])
                whh_p = whh_p.at[l, d * H2:(d + 1) * H2, dst].set(whh[l, d, :, src])
                b_p = b_p.at[l, 0, dst].set(bias[l, d, src])
    return dict(lstm_wih_f=wih_f, lstm_wih_b=wih_b,
                lstm_whh_pk=whh_p, lstm_b_pk=b_p)


# ------------------------------ StageCS forward -------------------------------
def stagecs_forward(queries, sum_idx, params):
    B, L = queries.shape
    N = B * L
    NPAD = ((N + 7) // 8) * 8          # sublane-align the flattened token axis

    attention_mask = queries != PAD_ID
    # TODO(synk): the pretrained AutoModelForCausalLM transformer body and its
    # tokenizer cannot be reproduced here; a deterministic linear LM head stands
    # in, so the attention mask is unused and no .half() cast of the LM happens.
    del attention_mask

    # Host-side index glue on the token ids (analogue of the .nonzero() /
    # blocked_indices / sum_idx bookkeeping in the PyTorch forward):
    #   * fused gather column: word-id for normal tokens, VOCAB + ordinal of
    #     the [PROMPT] token within its sequence for pseudo tokens,
    #   * shifted labels,
    #   * per-token CE weight implementing the [idx, L-1) window, the pad
    #     ignore_index, and the flattened-axis padding in one f32 mask.
    is_prompt = queries == PSEUDO_ID
    k_idx = jnp.clip(jnp.cumsum(is_prompt.astype(jnp.int32), axis=1) - 1,
                     0, SPELL - 1)
    col = jnp.where(is_prompt, VOCAB + k_idx, queries).astype(jnp.int32)
    labels = jnp.concatenate(
        [queries[:, 1:], jnp.full((B, 1), PAD_ID, jnp.int32)], axis=1)
    pos = jnp.arange(L, dtype=jnp.int32)[None, :]
    # `labels != PAD_ID` == ignore_index semantics (a real id-0 target would be
    # dropped, matching PyTorch); `labels < VOCAB` guards the otherwise-silent
    # pseudo-token-as-label edge case.
    valid = ((pos >= sum_idx.astype(jnp.int32)[:, None]) & (pos < L - 1)
             & (labels != PAD_ID) & (labels < VOCAB))

    def flatpad_i(x, fill):
        x = x.reshape(N, 1).astype(jnp.int32)
        return jnp.pad(x, ((0, NPAD - N), (0, 0)), constant_values=fill)

    col_pad = flatpad_i(col, PAD_ID)
    lab_pad = flatpad_i(labels, PAD_ID)
    valid_pad = jnp.pad(valid.astype(jnp.float32).reshape(N, 1),
                        ((0, NPAD - N), (0, 0)))              # zero weight on padding

    def kernel(col_ref, lab_ref, valid_ref, wemb_ref, pemb_ref,
               wihf_ref, wihb_ref, whh_ref, bls_ref,
               w1_ref, b1_ref, w2_ref, b2_ref, lmw_ref, lmb_ref, out_ref):
        f32, bf16 = jnp.float32, jnp.bfloat16

        # ---- PromptAgent: 2-layer BiLSTM (fwd+bwd fused) + MLP head ---------
        cur = pemb_ref[...]                                   # (SPELL, HIDDEN) f32
        for l in range(NUM_LSTM_LAYERS):
            cur16 = cur.astype(bf16)
            # Hoisted input-to-hidden projections: one (S,32)x(32,128) MXU dot
            # per direction (bias folded into the forward projection).
            xw_f = jnp.dot(cur16, wihf_ref[l].astype(bf16),
                           preferred_element_type=f32) + bls_ref[l]
            xw_b = jnp.dot(cur16, wihb_ref[l].astype(bf16),
                           preferred_element_type=f32)
            whh16 = whh_ref[l].astype(bf16)                   # (2*H2, 128) block-diag
            h = jnp.zeros((1, 2 * H2), f32)                   # [h_fwd | h_bwd]
            c = jnp.zeros((1, 2 * H2), f32)
            hs = []
            for t in range(SPELL):                            # S=8, tiny static unroll
                g = (xw_f[t:t + 1, :] + xw_b[SPELL - 1 - t:SPELL - t, :]
                     + jnp.dot(h.astype(bf16), whh16, preferred_element_type=f32))
                s_all = jax.nn.sigmoid(g)                     # one full 128-lane pass
                i_g = s_all[:, 0 * 2 * H2:1 * 2 * H2]
                f_g = s_all[:, 1 * 2 * H2:2 * 2 * H2]
                o_g = s_all[:, 3 * 2 * H2:4 * 2 * H2]
                g_g = jnp.tanh(g[:, 2 * 2 * H2:3 * 2 * H2])   # gate math kept f32 (v5e)
                c = f_g * c + i_g * g_g
                h = o_g * jnp.tanh(c)
                hs.append(h)                                  # values only: no (1,16) stores
            # Reassemble original time order as one contiguous (S, HIDDEN) slab.
            cur = jnp.concatenate(
                [jnp.concatenate([hs[t][:, :H2], hs[SPELL - 1 - t][:, H2:]], axis=1)
                 for t in range(SPELL)], axis=0)
        h1 = jnp.maximum(
            jnp.dot(cur.astype(bf16), w1_ref[...].astype(bf16),
                    preferred_element_type=f32) + b1_ref[...], 0.0)
        replace = (jnp.dot(h1.astype(bf16), w2_ref[...].astype(bf16),
                           preferred_element_type=f32) + b2_ref[...])  # (SPELL, HIDDEN)

        # ---- fused embedding lookup + [PROMPT] injection: ONE one-hot matmul
        # against the concatenated [word_emb ; replace_embeds] table ----------
        table = jnp.concatenate([wemb_ref[...], replace], axis=0).astype(bf16)
        col = col_ref[...]                                    # (NPAD, 1) int32
        iota_c = lax.broadcasted_iota(jnp.int32, (NPAD, TOTAL_COLS), 1)
        onehot = jnp.where(iota_c == col, 1.0, 0.0).astype(bf16)
        embeds = jnp.dot(onehot, table,
                         preferred_element_type=f32)          # (NPAD, HIDDEN)

        # ---- LM head (stand-in linear) ---------------------------------------
        logits = (jnp.dot(embeds.astype(bf16), lmw_ref[...].astype(bf16),
                          preferred_element_type=f32) + lmb_ref[...])  # (NPAD, V)
        # TODO(synk): with a real LM head (V ~ 32k-50k) do NOT materialize full
        # logits: tile the vocab axis on a grid with an online logsumexp CE and
        # add a parallel batch grid axis (v7x dual-TC / 64 MiB VMEM).

        # ---- shifted CrossEntropy(ignore_index=pad, reduction='sum') / B ----
        lab = lab_ref[...]                                    # (NPAD, 1) int32
        m = jnp.max(logits, axis=-1, keepdims=True)
        lse = jnp.log(jnp.sum(jnp.exp(logits - m), axis=-1, keepdims=True)) + m
        iota_v = lax.broadcasted_iota(jnp.int32, (NPAD, VOCAB), 1)
        logit_lab = jnp.sum(jnp.where(iota_v == lab, logits, 0.0),
                            axis=-1, keepdims=True)           # (NPAD, 1)
        nll = valid_ref[...] * (lse - logit_lab)              # masked -log p(label)
        out_ref[...] = jnp.sum(nll, keepdims=True) * (1.0 / B)

    out = pl.pallas_call(
        kernel,
        out_shape=jax.ShapeDtypeStruct((1, 1), jnp.float32),
        in_specs=[VMEM_SPEC] * 15,
        out_specs=VMEM_SPEC,
    )(col_pad, lab_pad, valid_pad,
      params["word_emb"], params["prompt_emb"],
      params["lstm_wih_f"], params["lstm_wih_b"],
      params["lstm_whh_pk"], params["lstm_b_pk"],
      params["mlp_w1"], params["mlp_b1"], params["mlp_w2"], params["mlp_b2"],
      params["lm_w"], params["lm_b"])
    return out[0, 0]


# -------------------------- deterministic parameters -------------------------
def init_params(key):
    ks = jax.random.split(key, 11)

    def nrm(k, shape, scale=0.1):
        return jax.random.normal(k, shape, jnp.float32) * scale

    wih = nrm(ks[2], (NUM_LSTM_LAYERS, 2, HIDDEN, 4 * H2))
    whh = nrm(ks[3], (NUM_LSTM_LAYERS, 2, H2, 4 * H2))
    lb = nrm(ks[4], (NUM_LSTM_LAYERS, 2, 4 * H2))            # b_ih + b_hh
    params = dict(
        word_emb=nrm(ks[0], (VOCAB, HIDDEN), 0.02),          # LM embeddings
        prompt_emb=nrm(ks[1], (SPELL, HIDDEN), 0.02),        # nn.Embedding
        mlp_w1=nrm(ks[5], (HIDDEN, HIDDEN)),
        mlp_b1=nrm(ks[6], (1, HIDDEN)),
        mlp_w2=nrm(ks[7], (HIDDEN, HIDDEN)),
        mlp_b2=nrm(ks[8], (1, HIDDEN)),
        lm_w=nrm(ks[9], (HIDDEN, VOCAB)),
        lm_b=nrm(ks[10], (1, VOCAB)),
    )
    params.update(pack_bilstm(wih, whh, lb))                 # lane-dense BiLSTM layout
    return params


def build_queries(key):
    # get_query analogue with synthetic token ids (tokenizer is untranslatable):
    # left = [PROMPT]*t0 + code + [PROMPT]*t1 ; input = left + [SEP] + tgt + [EOS]
    k0, k1, k2, k3 = jax.random.split(key, 4)
    code0 = [int(v) for v in jax.random.randint(k0, (6,), 5, VOCAB)]
    code1 = [int(v) for v in jax.random.randint(k1, (8,), 5, VOCAB)]
    tgt0 = [int(v) for v in jax.random.randint(k2, (4,), 5, VOCAB)]
    tgt1 = [int(v) for v in jax.random.randint(k3, (3,), 5, VOCAB)]
    seqs, idxs = [], []
    for code, tgt in ((code0, tgt0), (code1, tgt1)):
        left = [PSEUDO_ID] * TEMPLATE[0] + code + [PSEUDO_ID] * TEMPLATE[1]
        right = tgt + [EOS_ID]
        seqs.append(left + [SEP_ID] + right)
        idxs.append(len(left))
    max_len = max(len(s) for s in seqs)
    padded = [s + [PAD_ID] * (max_len - len(s)) for s in seqs]   # pad_sequence
    return jnp.asarray(padded, jnp.int32), jnp.asarray(idxs, jnp.int32)


if __name__ == "__main__":
    key = jax.random.PRNGKey(0)
    kp, kq = jax.random.split(key)
    params = init_params(kp)
    queries, sum_idx = build_queries(kq)      # queries: (2, 21) int32
    loss = stagecs_forward(queries, sum_idx, params)
    jax.block_until_ready(loss)
    print("KERNEL_OK")
</pallas_src>

<mosaic_0001>
module attributes {stable_mosaic.version = 11 : i64} {
  func.func @kernel(%arg0: memref<48x1xi32, #tpu.memory_space<vmem>>, %arg1: memref<48x1xi32, #tpu.memory_space<vmem>>, %arg2: memref<48x1xf32, #tpu.memory_space<vmem>>, %arg3: memref<128x32xf32, #tpu.memory_space<vmem>>, %arg4: memref<8x32xf32, #tpu.memory_space<vmem>>, %arg5: memref<2x32x128xf32, #tpu.memory_space<vmem>>, %arg6: memref<2x32x128xf32, #tpu.memory_space<vmem>>, %arg7: memref<2x32x128xf32, #tpu.memory_space<vmem>>, %arg8: memref<2x1x128xf32, #tpu.memory_space<vmem>>, %arg9: memref<32x32xf32, #tpu.memory_space<vmem>>, %arg10: memref<1x32xf32, #tpu.memory_space<vmem>>, %arg11: memref<32x32xf32, #tpu.memory_space<vmem>>, %arg12: memref<1x32xf32, #tpu.memory_space<vmem>>, %arg13: memref<32x128xf32, #tpu.memory_space<vmem>>, %arg14: memref<1x128xf32, #tpu.memory_space<vmem>>, %arg15: memref<1x1xf32, #tpu.memory_space<vmem>>) attributes {dimension_semantics = [], scalar_prefetch = 0 : i64, scratch_operands = 0 : i64, tpu.core_type = #tpu.core_type<tc>} {
    %c0 = arith.constant 0 : index
    %c0_0 = arith.constant 0 : index
    %0 = vector.load %arg4[%c0, %c0_0] : memref<8x32xf32, #tpu.memory_space<vmem>>, vector<8x32xf32>
    %1 = arith.truncf %0 : vector<8x32xf32> to vector<8x32xbf16>
    %c0_1 = arith.constant 0 : index
    %c0_2 = arith.constant 0 : index
    %c0_3 = arith.constant 0 : index
    %2 = vector.load %arg5[%c0_1, %c0_2, %c0_3] : memref<2x32x128xf32, #tpu.memory_space<vmem>>, vector<1x32x128xf32>
    %3 = vector.shape_cast %2 : vector<1x32x128xf32> to vector<32x128xf32>
    %4 = arith.truncf %3 : vector<32x128xf32> to vector<32x128xbf16>
    %cst = arith.constant dense<0.000000e+00> : vector<8x128xf32>
    %5 = tpu.matmul %1, %4, %cst {dimension_numbers = #tpu.dot_dimension_numbers<[1], [0], [0], [1], [0, 0, 1, 1], [], []>} : vector<8x32xbf16>, vector<32x128xbf16>, vector<8x128xf32> -> vector<8x128xf32>
    %c0_4 = arith.constant 0 : index
    %c0_5 = arith.constant 0 : index
    %c0_6 = arith.constant 0 : index
    %6 = vector.load %arg8[%c0_4, %c0_5, %c0_6] : memref<2x1x128xf32, #tpu.memory_space<vmem>>, vector<1x1x128xf32>
    %7 = vector.shape_cast %6 : vector<1x1x128xf32> to vector<1x128xf32>
    %8 = vector.broadcast %7 : vector<1x128xf32> to vector<8x128xf32>
    %9 = arith.addf %5, %8 : vector<8x128xf32>
    %c0_7 = arith.constant 0 : index
    %c0_8 = arith.constant 0 : index
    %c0_9 = arith.constant 0 : index
    %10 = vector.load %arg6[%c0_7, %c0_8, %c0_9] : memref<2x32x128xf32, #tpu.memory_space<vmem>>, vector<1x32x128xf32>
    %11 = vector.shape_cast %10 : vector<1x32x128xf32> to vector<32x128xf32>
    %12 = arith.truncf %11 : vector<32x128xf32> to vector<32x128xbf16>
    %cst_10 = arith.constant dense<0.000000e+00> : vector<8x128xf32>
    %13 = tpu.matmul %1, %12, %cst_10 {dimension_numbers = #tpu.dot_dimension_numbers<[1], [0], [0], [1], [0, 0, 1, 1], [], []>} : vector<8x32xbf16>, vector<32x128xbf16>, vector<8x128xf32> -> vector<8x128xf32>
    %c0_11 = arith.constant 0 : index
    %c0_12 = arith.constant 0 : index
    %c0_13 = arith.constant 0 : index
    %14 = vector.load %arg7[%c0_11, %c0_12, %c0_13] : memref<2x32x128xf32, #tpu.memory_space<vmem>>, vector<1x32x128xf32>
    %15 = vector.shape_cast %14 : vector<1x32x128xf32> to vector<32x128xf32>
    %16 = arith.truncf %15 : vector<32x128xf32> to vector<32x128xbf16>
    %cst_14 = arith.constant 0.000000e+00 : f32
    %17 = vector.broadcast %cst_14 : f32 to vector<1x32xf32>
    %cst_15 = arith.constant 0.000000e+00 : f32
    %18 = vector.broadcast %cst_15 : f32 to vector<1x32xf32>
    %19 = vector.extract_strided_slice %9 {offsets = [0, 0], sizes = [1, 128], strides = [1, 1]} : vector<8x128xf32> to vector<1x128xf32>
    %20 = vector.extract_strided_slice %13 {offsets = [7, 0], sizes = [1, 128], strides = [1, 1]} : vector<8x128xf32> to vector<1x128xf32>
    %21 = arith.addf %19, %20 : vector<1x128xf32>
    %22 = arith.truncf %17 : vector<1x32xf32> to vector<1x32xbf16>
    %cst_16 = arith.constant dense<0.000000e+00> : vector<1x128xf32>
    %23 = tpu.matmul %22, %16, %cst_16 {dimension_numbers = #tpu.dot_dimension_numbers<[1], [0], [0], [1], [0, 0, 1, 1], [], []>} : vector<1x32xbf16>, vector<32x128xbf16>, vector<1x128xf32> -> vector<1x128xf32>
    %24 = arith.addf %21, %23 : vector<1x128xf32>
    %25 = arith.negf %24 : vector<1x128xf32>
    %26 = math.exp %25 : vector<1x128xf32>
    %cst_17 = arith.constant 1.000000e+00 : f32
    %27 = vector.broadcast %cst_17 : f32 to vector<1x128xf32>
    %28 = arith.addf %27, %26 : vector<1x128xf32>
    %29 = arith.divf %27, %28 : vector<1x128xf32>
    %30 = vector.extract_strided_slice %29 {offsets = [0, 0], sizes = [1, 32], strides = [1, 1]} : vector<1x128xf32> to vector<1x32xf32>
    %31 = vector.extract_strided_slice %29 {offsets = [0, 32], sizes = [1, 32], strides = [1, 1]} : vector<1x128xf32> to vector<1x32xf32>
    %32 = vector.extract_strided_slice %29 {offsets = [0, 96], sizes = [1, 32], strides = [1, 1]} : vector<1x128xf32> to vector<1x32xf32>
    %33 = vector.extract_strided_slice %24 {offsets = [0, 64], sizes = [1, 32], strides = [1, 1]} : vector<1x128xf32> to vector<1x32xf32>
    %34 = math.tanh %33 : vector<1x32xf32>
    %35 = arith.mulf %31, %18 : vector<1x32xf32>
    %36 = arith.mulf %30, %34 : vector<1x32xf32>
    %37 = arith.addf %35, %36 : vector<1x32xf32>
    %38 = math.tanh %37 : vector<1x32xf32>
    %39 = arith.mulf %32, %38 : vector<1x32xf32>
    %40 = vector.extract_strided_slice %9 {offsets = [1, 0], sizes = [1, 128], strides = [1, 1]} : vector<8x128xf32> to vector<1x128xf32>
    %41 = vector.extract_strided_slice %13 {offsets = [6, 0], sizes = [1, 128], strides = [1, 1]} : vector<8x128xf32> to vector<1x128xf32>
    %42 = arith.addf %40, %41 : vector<1x128xf32>
    %43 = arith.truncf %39 : vector<1x32xf32> to vector<1x32xbf16>
    %cst_18 = arith.constant dense<0.000000e+00> : vector<1x128xf32>
    %44 = tpu.matmul %43, %16, %cst_18 {dimension_numbers = #tpu.dot_dimension_numbers<[1], [0], [0], [1], [0, 0, 1, 1], [], []>} : vector<1x32xbf16>, vector<32x128xbf16>, vector<1x128xf32> -> vector<1x128xf32>
    %45 = arith.addf %42, %44 : vector<1x128xf32>
    %46 = arith.negf %45 : vector<1x128xf32>
    %47 = math.exp %46 : vector<1x128xf32>
    %cst_19 = arith.constant 1.000000e+00 : f32
    %48 = vector.broadcast %cst_19 : f32 to vector<1x128xf32>
    %49 = arith.addf %48, %47 : vector<1x128xf32>
    %50 = arith.divf %48, %49 : vector<1x128xf32>
    %51 = vector.extract_strided_slice %50 {offsets = [0, 0], sizes = [1, 32], strides = [1, 1]} : vector<1x128xf32> to vector<1x32xf32>
    %52 = vector.extract_strided_slice %50 {offsets = [0, 32], sizes = [1, 32], strides = [1, 1]} : vector<1x128xf32> to vector<1x32xf32>
    %53 = vector.extract_strided_slice %50 {offsets = [0, 96], sizes = [1, 32], strides = [1, 1]} : vector<1x128xf32> to vector<1x32xf32>
    %54 = vector.extract_strided_slice %45 {offsets = [0, 64], sizes = [1, 32], strides = [1, 1]} : vector<1x128xf32> to vector<1x32xf32>
    %55 = math.tanh %54 : vector<1x32xf32>
    %56 = arith.mulf %52, %37 : vector<1x32xf32>
    %57 = arith.mulf %51, %55 : vector<1x32xf32>
    %58 = arith.addf %56, %57 : vector<1x32xf32>
    %59 = math.tanh %58 : vector<1x32xf32>
    %60 = arith.mulf %53, %59 : vector<1x32xf32>
    %61 = vector.extract_strided_slice %9 {offsets = [2, 0], sizes = [1, 128], strides = [1, 1]} : vector<8x128xf32> to vector<1x128xf32>
    %62 = vector.extract_strided_slice %13 {offsets = [5, 0], sizes = [1, 128], strides = [1, 1]} : vector<8x128xf32> to vector<1x128xf32>
    %63 = arith.addf %61, %62 : vector<1x128xf32>
    %64 = arith.truncf %60 : vector<1x32xf32> to vector<1x32xbf16>
    %cst_20 = arith.constant dense<0.000000e+00> : vector<1x128xf32>
    %65 = tpu.matmul %64, %16, %cst_20 {dimension_numbers = #tpu.dot_dimension_numbers<[1], [0], [0], [1], [0, 0, 1, 1], [], []>} : vector<1x32xbf16>, vector<32x128xbf16>, vector<1x128xf32> -> vector<1x128xf32>
    %66 = arith.addf %63, %65 : vector<1x128xf32>
    %67 = arith.negf %66 : vector<1x128xf32>
    %68 = math.exp %67 : vector<1x128xf32>
    %cst_21 = arith.constant 1.000000e+00 : f32
    %69 = vector.broadcast %cst_21 : f32 to vector<1x128xf32>
    %70 = arith.addf %69, %68 : vector<1x128xf32>
    %71 = arith.divf %69, %70 : vector<1x128xf32>
    %72 = vector.extract_strided_slice %71 {offsets = [0, 0], sizes = [1, 32], strides = [1, 1]} : vector<1x128xf32> to vector<1x32xf32>
    %73 = vector.extract_strided_slice %71 {offsets = [0, 32], sizes = [1, 32], strides = [1, 1]} : vector<1x128xf32> to vector<1x32xf32>
    %74 = vector.extract_strided_slice %71 {offsets = [0, 96], sizes = [1, 32], strides = [1, 1]} : vector<1x128xf32> to vector<1x32xf32>
    %75 = vector.extract_strided_slice %66 {offsets = [0, 64], sizes = [1, 32], strides = [1, 1]} : vector<1x128xf32> to vector<1x32xf32>
    %76 = math.tanh %75 : vector<1x32xf32>
    %77 = arith.mulf %73, %58 : vector<1x32xf32>
    %78 = arith.mulf %72, %76 : vector<1x32xf32>
    %79 = arith.addf %77, %78 : vector<1x32xf32>
    %80 = math.tanh %79 : vector<1x32xf32>
    %81 = arith.mulf %74, %80 : vector<1x32xf32>
    %82 = vector.extract_strided_slice %9 {offsets = [3, 0], sizes = [1, 128], strides = [1, 1]} : vector<8x128xf32> to vector<1x128xf32>
    %83 = vector.extract_strided_slice %13 {offsets = [4, 0], sizes = [1, 128], strides = [1, 1]} : vector<8x128xf32> to vector<1x128xf32>
    %84 = arith.addf %82, %83 : vector<1x128xf32>
    %85 = arith.truncf %81 : vector<1x32xf32> to vector<1x32xbf16>
    %cst_22 = arith.constant dense<0.000000e+00> : vector<1x128xf32>
    %86 = tpu.matmul %85, %16, %cst_22 {dimension_numbers = #tpu.dot_dimension_numbers<[1], [0], [0], [1], [0, 0, 1, 1], [], []>} : vector<1x32xbf16>, vector<32x128xbf16>, vector<1x128xf32> -> vector<1x128xf32>
    %87 = arith.addf %84, %86 : vector<1x128xf32>
    %88 = arith.negf %87 : vector<1x128xf32>
    %89 = math.exp %88 : vector<1x128xf32>
    %cst_23 = arith.constant 1.000000e+00 : f32
    %90 = vector.broadcast %cst_23 : f32 to vector<1x128xf32>
    %91 = arith.addf %90, %89 : vector<1x128xf32>
    %92 = arith.divf %90, %91 : vector<1x128xf32>
    %93 = vector.extract_strided_slice %92 {offsets = [0, 0], sizes = [1, 32], strides = [1, 1]} : vector<1x128xf32> to vector<1x32xf32>
    %94 = vector.extract_strided_slice %92 {offsets = [0, 32], sizes = [1, 32], strides = [1, 1]} : vector<1x128xf32> to vector<1x32xf32>
    %95 = vector.extract_strided_slice %92 {offsets = [0, 96], sizes = [1, 32], strides = [1, 1]} : vector<1x128xf32> to vector<1x32xf32>
    %96 = vector.extract_strided_slice %87 {offsets = [0, 64], sizes = [1, 32], strides = [1, 1]} : vector<1x128xf32> to vector<1x32xf32>
    %97 = math.tanh %96 : vector<1x32xf32>
    %98 = arith.mulf %94, %79 : vector<1x32xf32>
    %99 = arith.mulf %93, %97 : vector<1x32xf32>
    %100 = arith.addf %98, %99 : vector<1x32xf32>
    %101 = math.tanh %100 : vector<1x32xf32>
    %102 = arith.mulf %95, %101 : vector<1x32xf32>
    %103 = vector.extract_strided_slice %9 {offsets = [4, 0], sizes = [1, 128], strides = [1, 1]} : vector<8x128xf32> to vector<1x128xf32>
    %104 = vector.extract_strided_slice %13 {offsets = [3, 0], sizes = [1, 128], strides = [1, 1]} : vector<8x128xf32> to vector<1x128xf32>
    %105 = arith.addf %103, %104 : vector<1x128xf32>
    %106 = arith.truncf %102 : vector<1x32xf32> to vector<1x32xbf16>
    %cst_24 = arith.constant dense<0.000000e+00> : vector<1x128xf32>
    %107 = tpu.matmul %106, %16, %cst_24 {dimension_numbers = #tpu.dot_dimension_numbers<[1], [0], [0], [1], [0, 0, 1, 1], [], []>} : vector<1x32xbf16>, vector<32x128xbf16>, vector<1x128xf32> -> vector<1x128xf32>
    %108 = arith.addf %105, %107 : vector<1x128xf32>
    %109 = arith.negf %108 : vector<1x128xf32>
    %110 = math.exp %109 : vector<1x128xf32>
    %cst_25 = arith.constant 1.000000e+00 : f32
    %111 = vector.broadcast %cst_25 : f32 to vector<1x128xf32>
    %112 = arith.addf %111, %110 : vector<1x128xf32>
    %113 = arith.divf %111, %112 : vector<1x128xf32>
    %114 = vector.extract_strided_slice %113 {offsets = [0, 0], sizes = [1, 32], strides = [1, 1]} : vector<1x128xf32> to vector<1x32xf32>
    %115 = vector.extract_strided_slice %113 {offsets = [0, 32], sizes = [1, 32], strides = [1, 1]} : vector<1x128xf32> to vector<1x32xf32>
    %116 = vector.extract_strided_slice %113 {offsets = [0, 96], sizes = [1, 32], strides = [1, 1]} : vector<1x128xf32> to vector<1x32xf32>
    %117 = vector.extract_strided_slice %108 {offsets = [0, 64], sizes = [1, 32], strides = [1, 1]} : vector<1x128xf32> to vector<1x32xf32>
    %118 = math.tanh %117 : vector<1x32xf32>
    %119 = arith.mulf %115, %100 : vector<1x32xf32>
    %120 = arith.mulf %114, %118 : vector<1x32xf32>
    %121 = arith.addf %119, %120 : vector<1x32xf32>
    %122 = math.tanh %121 : vector<1x32xf32>
    %123 = arith.mulf %116, %122 : vector<1x32xf32>
    %124 = vector.extract_strided_slice %9 {offsets = [5, 0], sizes = [1, 128], strides = [1, 1]} : vector<8x128xf32> to vector<1x128xf32>
    %125 = vector.extract_strided_slice %13 {offsets = [2, 0], sizes = [1, 128], strides = [1, 1]} : vector<8x128xf32> to vector<1x128xf32>
    %126 = arith.addf %124, %125 : vector<1x128xf32>
    %127 = arith.truncf %123 : vector<1x32xf32> to vector<1x32xbf16>
    %cst_26 = arith.constant dense<0.000000e+00> : vector<1x128xf32>
    %128 = tpu.matmul %127, %16, %cst_26 {dimension_numbers = #tpu.dot_dimension_numbers<[1], [0], [0], [1], [0, 0, 1, 1], [], []>} : vector<1x32xbf16>, vector<32x128xbf16>, vector<1x128xf32> -> vector<1x128xf32>
    %129 = arith.addf %126, %128 : vector<1x128xf32>
    %130 = arith.negf %129 : vector<1x128xf32>
    %131 = math.exp %130 : vector<1x128xf32>
    %cst_27 = arith.constant 1.000000e+00 : f32
    %132 = vector.broadcast %cst_27 : f32 to vector<1x128xf32>
    %133 = arith.addf %132, %131 : vector<1x128xf32>
    %134 = arith.divf %132, %133 : vector<1x128xf32>
    %135 = vector.extract_strided_slice %134 {offsets = [0, 0], sizes = [1, 32], strides = [1, 1]} : vector<1x128xf32> to vector<1x32xf32>
    %136 = vector.extract_strided_slice %134 {offsets = [0, 32], sizes = [1, 32], strides = [1, 1]} : vector<1x128xf32> to vector<1x32xf32>
    %137 = vector.extract_strided_slice %134 {offsets = [0, 96], sizes = [1, 32], strides = [1, 1]} : vector<1x128xf32> to vector<1x32xf32>
    %138 = vector.extract_strided_slice %129 {offsets = [0, 64], sizes = [1, 32], strides = [1, 1]} : vector<1x128xf32> to vector<1x32xf32>
    %139 = math.tanh %138 : vector<1x32xf32>
    %140 = arith.mulf %136, %121 : vector<1x32xf32>
    %141 = arith.mulf %135, %139 : vector<1x32xf32>
    %142 = arith.addf %140, %141 : vector<1x32xf32>
    %143 = math.tanh %142 : vector<1x32xf32>
    %144 = arith.mulf %137, %143 : vector<1x32xf32>
    %145 = vector.extract_strided_slice %9 {offsets = [6, 0], sizes = [1, 128], strides = [1, 1]} : vector<8x128xf32> to vector<1x128xf32>
    %146 = vector.extract_strided_slice %13 {offsets = [1, 0], sizes = [1, 128], strides = [1, 1]} : vector<8x128xf32> to vector<1x128xf32>
    %147 = arith.addf %145, %146 : vector<1x128xf32>
    %148 = arith.truncf %144 : vector<1x32xf32> to vector<1x32xbf16>
    %cst_28 = arith.constant dense<0.000000e+00> : vector<1x128xf32>
    %149 = tpu.matmul %148, %16, %cst_28 {dimension_numbers = #tpu.dot_dimension_numbers<[1], [0], [0], [1], [0, 0, 1, 1], [], []>} : vector<1x32xbf16>, vector<32x128xbf16>, vector<1x128xf32> -> vector<1x128xf32>
    %150 = arith.addf %147, %149 : vector<1x128xf32>
    %151 = arith.negf %150 : vector<1x128xf32>
    %152 = math.exp %151 : vector<1x128xf32>
    %cst_29 = arith.constant 1.000000e+00 : f32
    %153 = vector.broadcast %cst_29 : f32 to vector<1x128xf32>
    %154 = arith.addf %153, %152 : vector<1x128xf32>
    %155 = arith.divf %153, %154 : vector<1x128xf32>
    %156 = vector.extract_strided_slice %155 {offsets = [0, 0], sizes = [1, 32], strides = [1, 1]} : vector<1x128xf32> to vector<1x32xf32>
    %157 = vector.extract_strided_slice %155 {offsets = [0, 32], sizes = [1, 32], strides = [1, 1]} : vector<1x128xf32> to vector<1x32xf32>
    %158 = vector.extract_strided_slice %155 {offsets = [0, 96], sizes = [1, 32], strides = [1, 1]} : vector<1x128xf32> to vector<1x32xf32>
    %159 = vector.extract_strided_slice %150 {offsets = [0, 64], sizes = [1, 32], strides = [1, 1]} : vector<1x128xf32> to vector<1x32xf32>
    %160 = math.tanh %159 : vector<1x32xf32>
    %161 = arith.mulf %157, %142 : vector<1x32xf32>
    %162 = arith.mulf %156, %160 : vector<1x32xf32>
    %163 = arith.addf %161, %162 : vector<1x32xf32>
    %164 = math.tanh %163 : vector<1x32xf32>
    %165 = arith.mulf %158, %164 : vector<1x32xf32>
    %166 = vector.extract_strided_slice %9 {offsets = [7, 0], sizes = [1, 128], strides = [1, 1]} : vector<8x128xf32> to vector<1x128xf32>
    %167 = vector.extract_strided_slice %13 {offsets = [0, 0], sizes = [1, 128], strides = [1, 1]} : vector<8x128xf32> to vector<1x128xf32>
    %168 = arith.addf %166, %167 : vector<1x128xf32>
    %169 = arith.truncf %165 : vector<1x32xf32> to vector<1x32xbf16>
    %cst_30 = arith.constant dense<0.000000e+00> : vector<1x128xf32>
    %170 = tpu.matmul %169, %16, %cst_30 {dimension_numbers = #tpu.dot_dimension_numbers<[1], [0], [0], [1], [0, 0, 1, 1], [], []>} : vector<1x32xbf16>, vector<32x128xbf16>, vector<1x128xf32> -> vector<1x128xf32>
    %171 = arith.addf %168, %170 : vector<1x128xf32>
    %172 = arith.negf %171 : vector<1x128xf32>
    %173 = math.exp %172 : vector<1x128xf32>
    %cst_31 = arith.constant 1.000000e+00 : f32
    %174 = vector.broadcast %cst_31 : f32 to vector<1x128xf32>
    %175 = arith.addf %174, %173 : vector<1x128xf32>
    %176 = arith.divf %174, %175 : vector<1x128xf32>
    %177 = vector.extract_strided_slice %176 {offsets = [0, 0], sizes = [1, 32], strides = [1, 1]} : vector<1x128xf32> to vector<1x32xf32>
    %178 = vector.extract_strided_slice %176 {offsets = [0, 32], sizes = [1, 32], strides = [1, 1]} : vector<1x128xf32> to vector<1x32xf32>
    %179 = vector.extract_strided_slice %176 {offsets = [0, 96], sizes = [1, 32], strides = [1, 1]} : vector<1x128xf32> to vector<1x32xf32>
    %180 = vector.extract_strided_slice %171 {offsets = [0, 64], sizes = [1, 32], strides = [1, 1]} : vector<1x128xf32> to vector<1x32xf32>
    %181 = math.tanh %180 : vector<1x32xf32>
    %182 = arith.mulf %178, %163 : vector<1x32xf32>
    %183 = arith.mulf %177, %181 : vector<1x32xf32>
    %184 = arith.addf %182, %183 : vector<1x32xf32>
    %185 = math.tanh %184 : vector<1x32xf32>
    %186 = arith.mulf %179, %185 : vector<1x32xf32>
    %187 = vector.extract_strided_slice %39 {offsets = [0, 0], sizes = [1, 16], strides = [1, 1]} : vector<1x32xf32> to vector<1x16xf32>
    %188 = vector.extract_strided_slice %186 {offsets = [0, 16], sizes = [1, 16], strides = [1, 1]} : vector<1x32xf32> to vector<1x16xf32>
    %189 = tpu.concatenate %187, %188 in 1 : vector<1x16xf32>, vector<1x16xf32> -> vector<1x32xf32>
    %190 = vector.extract_strided_slice %60 {offsets = [0, 0], sizes = [1, 16], strides = [1, 1]} : vector<1x32xf32> to vector<1x16xf32>
    %191 = vector.extract_strided_slice %165 {offsets = [0, 16], sizes = [1, 16], strides = [1, 1]} : vector<1x32xf32> to vector<1x16xf32>
    %192 = tpu.concatenate %190, %191 in 1 : vector<1x16xf32>, vector<1x16xf32> -> vector<1x32xf32>
    %193 = vector.extract_strided_slice %81 {offsets = [0, 0], sizes = [1, 16], strides = [1, 1]} : vector<1x32xf32> to vector<1x16xf32>
    %194 = vector.extract_strided_slice %144 {offsets = [0, 16], sizes = [1, 16], strides = [1, 1]} : vector<1x32xf32> to vector<1x16xf32>
    %195 = tpu.concatenate %193, %194 in 1 : vector<1x16xf32>, vector<1x16xf32> -> vector<1x32xf32>
    %196 = vector.extract_strided_slice %102 {offsets = [0, 0], sizes = [1, 16], strides = [1, 1]} : vector<1x32xf32> to vector<1x16xf32>
    %197 = vector.extract_strided_slice %123 {offsets = [0, 16], sizes = [1, 16], strides = [1, 1]} : vector<1x32xf32> to vector<1x16xf32>
    %198 = tpu.concatenate %196, %197 in 1 : vector<1x16xf32>, vector<1x16xf32> -> vector<1x32xf32>
    %199 = vector.extract_strided_slice %123 {offsets = [0, 0], sizes = [1, 16], strides = [1, 1]} : vector<1x32xf32> to vector<1x16xf32>
    %200 = vector.extract_strided_slice %102 {offsets = [0, 16], sizes = [1, 16], strides = [1, 1]} : vector<1x32xf32> to vector<1x16xf32>
    %201 = tpu.concatenate %199, %200 in 1 : vector<1x16xf32>, vector<1x16xf32> -> vector<1x32xf32>
    %202 = vector.extract_strided_slice %144 {offsets = [0, 0], sizes = [1, 16], strides = [1, 1]} : vector<1x32xf32> to vector<1x16xf32>
    %203 = vector.extract_strided_slice %81 {offsets = [0, 16], sizes = [1, 16], strides = [1, 1]} : vector<1x32xf32> to vector<1x16xf32>
    %204 = tpu.concatenate %202, %203 in 1 : vector<1x16xf32>, vector<1x16xf32> -> vector<1x32xf32>
    %205 = vector.extract_strided_slice %165 {offsets = [0, 0], sizes = [1, 16], strides = [1, 1]} : vector<1x32xf32> to vector<1x16xf32>
    %206 = vector.extract_strided_slice %60 {offsets = [0, 16], sizes = [1, 16], strides = [1, 1]} : vector<1x32xf32> to vector<1x16xf32>
    %207 = tpu.concatenate %205, %206 in 1 : vector<1x16xf32>, vector<1x16xf32> -> vector<1x32xf32>
    %208 = vector.extract_strided_slice %186 {offsets = [0, 0], sizes = [1, 16], strides = [1, 1]} : vector<1x32xf32> to vector<1x16xf32>
    %209 = vector.extract_strided_slice %39 {offsets = [0, 16], sizes = [1, 16], strides = [1, 1]} : vector<1x32xf32> to vector<1x16xf32>
    %210 = tpu.concatenate %208, %209 in 1 : vector<1x16xf32>, vector<1x16xf32> -> vector<1x32xf32>
    %211 = tpu.concatenate %189, %192, %195, %198, %201, %204, %207, %210 in 0 : vector<1x32xf32>, vector<1x32xf32>, vector<1x32xf32>, vector<1x32xf32>, vector<1x32xf32>, vector<1x32xf32>, vector<1x32xf32>, vector<1x32xf32> -> vector<8x32xf32>
    %212 = arith.truncf %211 : vector<8x32xf32> to vector<8x32xbf16>
    %c1 = arith.constant 1 : index
    %c0_32 = arith.constant 0 : index
    %c0_33 = arith.constant 0 : index
    %213 = vector.load %arg5[%c1, %c0_32, %c0_33] : memref<2x32x128xf32, #tpu.memory_space<vmem>>, vector<1x32x128xf32>
    %214 = vector.shape_cast %213 : vector<1x32x128xf32> to vector<32x128xf32>
    %215 = arith.truncf %214 : vector<32x128xf32> to vector<32x128xbf16>
    %cst_34 = arith.constant dense<0.000000e+00> : vector<8x128xf32>
    %216 = tpu.matmul %212, %215, %cst_34 {dimension_numbers = #tpu.dot_dimension_numbers<[1], [0], [0], [1], [0, 0, 1, 1], [], []>} : vector<8x32xbf16>, vector<32x128xbf16>, vector<8x128xf32> -> vector<8x128xf32>
    %c1_35 = arith.constant 1 : index
    %c0_36 = arith.constant 0 : index
    %c0_37 = arith.constant 0 : index
    %217 = vector.load %arg8[%c1_35, %c0_36, %c0_37] : memref<2x1x128xf32, #tpu.memory_space<vmem>>, vector<1x1x128xf32>
    %218 = vector.shape_cast %217 : vector<1x1x128xf32> to vector<1x128xf32>
    %219 = vector.broadcast %218 : vector<1x128xf32> to vector<8x128xf32>
    %220 = arith.addf %216, %219 : vector<8x128xf32>
    %c1_38 = arith.constant 1 : index
    %c0_39 = arith.constant 0 : index
    %c0_40 = arith.constant 0 : index
    %221 = vector.load %arg6[%c1_38, %c0_39, %c0_40] : memref<2x32x128xf32, #tpu.memory_space<vmem>>, vector<1x32x128xf32>
    %222 = vector.shape_cast %221 : vector<1x32x128xf32> to vector<32x128xf32>
    %223 = arith.truncf %222 : vector<32x128xf32> to vector<32x128xbf16>
    %cst_41 = arith.constant dense<0.000000e+00> : vector<8x128xf32>
    %224 = tpu.matmul %212, %223, %cst_41 {dimension_numbers = #tpu.dot_dimension_numbers<[1], [0], [0], [1], [0, 0, 1, 1], [], []>} : vector<8x32xbf16>, vector<32x128xbf16>, vector<8x128xf32> -> vector<8x128xf32>
    %c1_42 = arith.constant 1 : index
    %c0_43 = arith.constant 0 : index
    %c0_44 = arith.constant 0 : index
    %225 = vector.load %arg7[%c1_42, %c0_43, %c0_44] : memref<2x32x128xf32, #tpu.memory_space<vmem>>, vector<1x32x128xf32>
    %226 = vector.shape_cast %225 : vector<1x32x128xf32> to vector<32x128xf32>
    %227 = arith.truncf %226 : vector<32x128xf32> to vector<32x128xbf16>
    %cst_45 = arith.constant 0.000000e+00 : f32
    %228 = vector.broadcast %cst_45 : f32 to vector<1x32xf32>
    %cst_46 = arith.constant 0.000000e+00 : f32
    %229 = vector.broadcast %cst_46 : f32 to vector<1x32xf32>
    %230 = vector.extract_strided_slice %220 {offsets = [0, 0], sizes = [1, 128], strides = [1, 1]} : vector<8x128xf32> to vector<1x128xf32>
    %231 = vector.extract_strided_slice %224 {offsets = [7, 0], sizes = [1, 128], strides = [1, 1]} : vector<8x128xf32> to vector<1x128xf32>
    %232 = arith.addf %230, %231 : vector<1x128xf32>
    %233 = arith.truncf %228 : vector<1x32xf32> to vector<1x32xbf16>
    %cst_47 = arith.constant dense<0.000000e+00> : vector<1x128xf32>
    %234 = tpu.matmul %233, %227, %cst_47 {dimension_numbers = #tpu.dot_dimension_numbers<[1], [0], [0], [1], [0, 0, 1, 1], [], []>} : vector<1x32xbf16>, vector<32x128xbf16>, vector<1x128xf32> -> vector<1x128xf32>
    %235 = arith.addf %232, %234 : vector<1x128xf32>
    %236 = arith.negf %235 : vector<1x128xf32>
    %237 = math.exp %236 : vector<1x128xf32>
    %cst_48 = arith.constant 1.000000e+00 : f32
    %238 = vector.broadcast %cst_48 : f32 to vector<1x128xf32>
    %239 = arith.addf %238, %237 : vector<1x128xf32>
    %240 = arith.divf %238, %239 : vector<1x128xf32>
    %241 = vector.extract_strided_slice %240 {offsets = [0, 0], sizes = [1, 32], strides = [1, 1]} : vector<1x128xf32> to vector<1x32xf32>
    %242 = vector.extract_strided_slice %240 {offsets = [0, 32], sizes = [1, 32], strides = [1, 1]} : vector<1x128xf32> to vector<1x32xf32>
    %243 = vector.extract_strided_slice %240 {offsets = [0, 96], sizes = [1, 32], strides = [1, 1]} : vector<1x128xf32> to vector<1x32xf32>
    %244 = vector.extract_strided_slice %235 {offsets = [0, 64], sizes = [1, 32], strides = [1, 1]} : vector<1x128xf32> to vector<1x32xf32>
    %245 = math.tanh %244 : vector<1x32xf32>
    %246 = arith.mulf %242, %229 : vector<1x32xf32>
    %247 = arith.mulf %241, %245 : vector<1x32xf32>
    %248 = arith.addf %246, %247 : vector<1x32xf32>
    %249 = math.tanh %248 : vector<1x32xf32>
    %250 = arith.mulf %243, %249 : vector<1x32xf32>
    %251 = vector.extract_strided_slice %220 {offsets = [1, 0], sizes = [1, 128], strides = [1, 1]} : vector<8x128xf32> to vector<1x128xf32>
    %252 = vector.extract_strided_slice %224 {offsets = [6, 0], sizes = [1, 128], strides = [1, 1]} : vector<8x128xf32> to vector<1x128xf32>
    %253 = arith.addf %251, %252 : vector<1x128xf32>
    %254 = arith.truncf %250 : vector<1x32xf32> to vector<1x32xbf16>
    %cst_49 = arith.constant dense<0.000000e+00> : vector<1x128xf32>
    %255 = tpu.matmul %254, %227, %cst_49 {dimension_numbers = #tpu.dot_dimension_numbers<[1], [0], [0], [1], [0, 0, 1, 1], [], []>} : vector<1x32xbf16>, vector<32x128xbf16>, vector<1x128xf32> -> vector<1x128xf32>
    %256 = arith.addf %253, %255 : vector<1x128xf32>
    %257 = arith.negf %256 : vector<1x128xf32>
    %258 = math.exp %257 : vector<1x128xf32>
    %cst_50 = arith.constant 1.000000e+00 : f32
    %259 = vector.broadcast %cst_50 : f32 to vector<1x128xf32>
    %260 = arith.addf %259, %258 : vector<1x128xf32>
    %261 = arith.divf %259, %260 : vector<1x128xf32>
    %262 = vector.extract_strided_slice %261 {offsets = [0, 0], sizes = [1, 32], strides = [1, 1]} : vector<1x128xf32> to vector<1x32xf32>
    %263 = vector.extract_strided_slice %261 {offsets = [0, 32], sizes = [1, 32], strides = [1, 1]} : vector<1x128xf32> to vector<1x32xf32>
    %264 = vector.extract_strided_slice %261 {offsets = [0, 96], sizes = [1, 32], strides = [1, 1]} : vector<1x128xf32> to vector<1x32xf32>
    %265 = vector.extract_strided_slice %256 {offsets = [0, 64], sizes = [1, 32], strides = [1, 1]} : vector<1x128xf32> to vector<1x32xf32>
    %266 = math.tanh %265 : vector<1x32xf32>
    %267 = arith.mulf %263, %248 : vector<1x32xf32>
    %268 = arith.mulf %262, %266 : vector<1x32xf32>
    %269 = arith.addf %267, %268 : vector<1x32xf32>
    %270 = math.tanh %269 : vector<1x32xf32>
    %271 = arith.mulf %264, %270 : vector<1x32xf32>
    %272 = vector.extract_strided_slice %220 {offsets = [2, 0], sizes = [1, 128], strides = [1, 1]} : vector<8x128xf32> to vector<1x128xf32>
    %273 = vector.extract_strided_slice %224 {offsets = [5, 0], sizes = [1, 128], strides = [1, 1]} : vector<8x128xf32> to vector<1x128xf32>
    %274 = arith.addf %272, %273 : vector<1x128xf32>
    %275 = arith.truncf %271 : vector<1x32xf32> to vector<1x32xbf16>
    %cst_51 = arith.constant dense<0.000000e+00> : vector<1x128xf32>
    %276 = tpu.matmul %275, %227, %cst_51 {dimension_numbers = #tpu.dot_dimension_numbers<[1], [0], [0], [1], [0, 0, 1, 1], [], []>} : vector<1x32xbf16>, vector<32x128xbf16>, vector<1x128xf32> -> vector<1x128xf32>
    %277 = arith.addf %274, %276 : vector<1x128xf32>
    %278 = arith.negf %277 : vector<1x128xf32>
    %279 = math.exp %278 : vector<1x128xf32>
    %cst_52 = arith.constant 1.000000e+00 : f32
    %280 = vector.broadcast %cst_52 : f32 to vector<1x128xf32>
    %281 = arith.addf %280, %279 : vector<1x128xf32>
    %282 = arith.divf %280, %281 : vector<1x128xf32>
    %283 = vector.extract_strided_slice %282 {offsets = [0, 0], sizes = [1, 32], strides = [1, 1]} : vector<1x128xf32> to vector<1x32xf32>
    %284 = vector.extract_strided_slice %282 {offsets = [0, 32], sizes = [1, 32], strides = [1, 1]} : vector<1x128xf32> to vector<1x32xf32>
    %285 = vector.extract_strided_slice %282 {offsets = [0, 96], sizes = [1, 32], strides = [1, 1]} : vector<1x128xf32> to vector<1x32xf32>
    %286 = vector.extract_strided_slice %277 {offsets = [0, 64], sizes = [1, 32], strides = [1, 1]} : vector<1x128xf32> to vector<1x32xf32>
    %287 = math.tanh %286 : vector<1x32xf32>
    %288 = arith.mulf %284, %269 : vector<1x32xf32>
    %289 = arith.mulf %283, %287 : vector<1x32xf32>
    %290 = arith.addf %288, %289 : vector<1x32xf32>
    %291 = math.tanh %290 : vector<1x32xf32>
    %292 = arith.mulf %285, %291 : vector<1x32xf32>
    %293 = vector.extract_strided_slice %220 {offsets = [3, 0], sizes = [1, 128], strides = [1, 1]} : vector<8x128xf32> to vector<1x128xf32>
    %294 = vector.extract_strided_slice %224 {offsets = [4, 0], sizes = [1, 128], strides = [1, 1]} : vector<8x128xf32> to vector<1x128xf32>
    %295 = arith.addf %293, %294 : vector<1x128xf32>
    %296 = arith.truncf %292 : vector<1x32xf32> to vector<1x32xbf16>
    %cst_53 = arith.constant dense<0.000000e+00> : vector<1x128xf32>
    %297 = tpu.matmul %296, %227, %cst_53 {dimension_numbers = #tpu.dot_dimension_numbers<[1], [0], [0], [1], [0, 0, 1, 1], [], []>} : vector<1x32xbf16>, vector<32x128xbf16>, vector<1x128xf32> -> vector<1x128xf32>
    %298 = arith.addf %295, %297 : vector<1x128xf32>
    %299 = arith.negf %298 : vector<1x128xf32>
    %300 = math.exp %299 : vector<1x128xf32>
    %cst_54 = arith.constant 1.000000e+00 : f32
    %301 = vector.broadcast %cst_54 : f32 to vector<1x128xf32>
    %302 = arith.addf %301, %300 : vector<1x128xf32>
    %303 = arith.divf %301, %302 : vector<1x128xf32>
    %304 = vector.extract_strided_slice %303 {offsets = [0, 0], sizes = [1, 32], strides = [1, 1]} : vector<1x128xf32> to vector<1x32xf32>
    %305 = vector.extract_strided_slice %303 {offsets = [0, 32], sizes = [1, 32], strides = [1, 1]} : vector<1x128xf32> to vector<1x32xf32>
    %306 = vector.extract_strided_slice %303 {offsets = [0, 96], sizes = [1, 32], strides = [1, 1]} : vector<1x128xf32> to vector<1x32xf32>
    %307 = vector.extract_strided_slice %298 {offsets = [0, 64], sizes = [1, 32], strides = [1, 1]} : vector<1x128xf32> to vector<1x32xf32>
    %308 = math.tanh %307 : vector<1x32xf32>
    %309 = arith.mulf %305, %290 : vector<1x32xf32>
    %310 = arith.mulf %304, %308 : vector<1x32xf32>
    %311 = arith.addf %309, %310 : vector<1x32xf32>
    %312 = math.tanh %311 : vector<1x32xf32>
    %313 = arith.mulf %306, %312 : vector<1x32xf32>
    %314 = vector.extract_strided_slice %220 {offsets = [4, 0], sizes = [1, 128], strides = [1, 1]} : vector<8x128xf32> to vector<1x128xf32>
    %315 = vector.extract_strided_slice %224 {offsets = [3, 0], sizes = [1, 128], strides = [1, 1]} : vector<8x128xf32> to vector<1x128xf32>
    %316 = arith.addf %314, %315 : vector<1x128xf32>
    %317 = arith.truncf %313 : vector<1x32xf32> to vector<1x32xbf16>
    %cst_55 = arith.constant dense<0.000000e+00> : vector<1x128xf32>
    %318 = tpu.matmul %317, %227, %cst_55 {dimension_numbers = #tpu.dot_dimension_numbers<[1], [0], [0], [1], [0, 0, 1, 1], [], []>} : vector<1x32xbf16>, vector<32x128xbf16>, vector<1x128xf32> -> vector<1x128xf32>
    %319 = arith.addf %316, %318 : vector<1x128xf32>
    %320 = arith.negf %319 : vector<1x128xf32>
    %321 = math.exp %320 : vector<1x128xf32>
    %cst_56 = arith.constant 1.000000e+00 : f32
    %322 = vector.broadcast %cst_56 : f32 to vector<1x128xf32>
    %323 = arith.addf %322, %321 : vector<1x128xf32>
    %324 = arith.divf %322, %323 : vector<1x128xf32>
    %325 = vector.extract_strided_slice %324 {offsets = [0, 0], sizes = [1, 32], strides = [1, 1]} : vector<1x128xf32> to vector<1x32xf32>
    %326 = vector.extract_strided_slice %324 {offsets = [0, 32], sizes = [1, 32], strides = [1, 1]} : vector<1x128xf32> to vector<1x32xf32>
    %327 = vector.extract_strided_slice %324 {offsets = [0, 96], sizes = [1, 32], strides = [1, 1]} : vector<1x128xf32> to vector<1x32xf32>
    %328 = vector.extract_strided_slice %319 {offsets = [0, 64], sizes = [1, 32], strides = [1, 1]} : vector<1x128xf32> to vector<1x32xf32>
    %329 = math.tanh %328 : vector<1x32xf32>
    %330 = arith.mulf %326, %311 : vector<1x32xf32>
    %331 = arith.mulf %325, %329 : vector<1x32xf32>
    %332 = arith.addf %330, %331 : vector<1x32xf32>
    %333 = math.tanh %332 : vector<1x32xf32>
    %334 = arith.mulf %327, %333 : vector<1x32xf32>
    %335 = vector.extract_strided_slice %220 {offsets = [5, 0], sizes = [1, 128], strides = [1, 1]} : vector<8x128xf32> to vector<1x128xf32>
    %336 = vector.extract_strided_slice %224 {offsets = [2, 0], sizes = [1, 128], strides = [1, 1]} : vector<8x128xf32> to vector<1x128xf32>
    %337 = arith.addf %335, %336 : vector<1x128xf32>
    %338 = arith.truncf %334 : vector<1x32xf32> to vector<1x32xbf16>
    %cst_57 = arith.constant dense<0.000000e+00> : vector<1x128xf32>
    %339 = tpu.matmul %338, %227, %cst_57 {dimension_numbers = #tpu.dot_dimension_numbers<[1], [0], [0], [1], [0, 0, 1, 1], [], []>} : vector<1x32xbf16>, vector<32x128xbf16>, vector<1x128xf32> -> vector<1x128xf32>
    %340 = arith.addf %337, %339 : vector<1x128xf32>
    %341 = arith.negf %340 : vector<1x128xf32>
    %342 = math.exp %341 : vector<1x128xf32>
    %cst_58 = arith.constant 1.000000e+00 : f32
    %343 = vector.broadcast %cst_58 : f32 to vector<1x128xf32>
    %344 = arith.addf %343, %342 : vector<1x128xf32>
    %345 = arith.divf %343, %344 : vector<1x128xf32>
    %346 = vector.extract_strided_slice %345 {offsets = [0, 0], sizes = [1, 32], strides = [1, 1]} : vector<1x128xf32> to vector<1x32xf32>
    %347 = vector.extract_strided_slice %345 {offsets = [0, 32], sizes = [1, 32], strides = [1, 1]} : vector<1x128xf32> to vector<1x32xf32>
    %348 = vector.extract_strided_slice %345 {offsets = [0, 96], sizes = [1, 32], strides = [1, 1]} : vector<1x128xf32> to vector<1x32xf32>
    %349 = vector.extract_strided_slice %340 {offsets = [0, 64], sizes = [1, 32], strides = [1, 1]} : vector<1x128xf32> to vector<1x32xf32>
    %350 = math.tanh %349 : vector<1x32xf32>
    %351 = arith.mulf %347, %332 : vector<1x32xf32>
    %352 = arith.mulf %346, %350 : vector<1x32xf32>
    %353 = arith.addf %351, %352 : vector<1x32xf32>
    %354 = math.tanh %353 : vector<1x32xf32>
    %355 = arith.mulf %348, %354 : vector<1x32xf32>
    %356 = vector.extract_strided_slice %220 {offsets = [6, 0], sizes = [1, 128], strides = [1, 1]} : vector<8x128xf32> to vector<1x128xf32>
    %357 = vector.extract_strided_slice %224 {offsets = [1, 0], sizes = [1, 128], strides = [1, 1]} : vector<8x128xf32> to vector<1x128xf32>
    %358 = arith.addf %356, %357 : vector<1x128xf32>
    %359 = arith.truncf %355 : vector<1x32xf32> to vector<1x32xbf16>
    %cst_59 = arith.constant dense<0.000000e+00> : vector<1x128xf32>
    %360 = tpu.matmul %359, %227, %cst_59 {dimension_numbers = #tpu.dot_dimension_numbers<[1], [0], [0], [1], [0, 0, 1, 1], [], []>} : vector<1x32xbf16>, vector<32x128xbf16>, vector<1x128xf32> -> vector<1x128xf32>
    %361 = arith.addf %358, %360 : vector<1x128xf32>
    %362 = arith.negf %361 : vector<1x128xf32>
    %363 = math.exp %362 : vector<1x128xf32>
    %cst_60 = arith.constant 1.000000e+00 : f32
    %364 = vector.broadcast %cst_60 : f32 to vector<1x128xf32>
    %365 = arith.addf %364, %363 : vector<1x128xf32>
    %366 = arith.divf %364, %365 : vector<1x128xf32>
    %367 = vector.extract_strided_slice %366 {offsets = [0, 0], sizes = [1, 32], strides = [1, 1]} : vector<1x128xf32> to vector<1x32xf32>
    %368 = vector.extract_strided_slice %366 {offsets = [0, 32], sizes = [1, 32], strides = [1, 1]} : vector<1x128xf32> to vector<1x32xf32>
    %369 = vector.extract_strided_slice %366 {offsets = [0, 96], sizes = [1, 32], strides = [1, 1]} : vector<1x128xf32> to vector<1x32xf32>
    %370 = vector.extract_strided_slice %361 {offsets = [0, 64], sizes = [1, 32], strides = [1, 1]} : vector<1x128xf32> to vector<1x32xf32>
    %371 = math.tanh %370 : vector<1x32xf32>
    %372 = arith.mulf %368, %353 : vector<1x32xf32>
    %373 = arith.mulf %367, %371 : vector<1x32xf32>
    %374 = arith.addf %372, %373 : vector<1x32xf32>
    %375 = math.tanh %374 : vector<1x32xf32>
    %376 = arith.mulf %369, %375 : vector<1x32xf32>
    %377 = vector.extract_strided_slice %220 {offsets = [7, 0], sizes = [1, 128], strides = [1, 1]} : vector<8x128xf32> to vector<1x128xf32>
    %378 = vector.extract_strided_slice %224 {offsets = [0, 0], sizes = [1, 128], strides = [1, 1]} : vector<8x128xf32> to vector<1x128xf32>
    %379 = arith.addf %377, %378 : vector<1x128xf32>
    %380 = arith.truncf %376 : vector<1x32xf32> to vector<1x32xbf16>
    %cst_61 = arith.constant dense<0.000000e+00> : vector<1x128xf32>
    %381 = tpu.matmul %380, %227, %cst_61 {dimension_numbers = #tpu.dot_dimension_numbers<[1], [0], [0], [1], [0, 0, 1, 1], [], []>} : vector<1x32xbf16>, vector<32x128xbf16>, vector<1x128xf32> -> vector<1x128xf32>
    %382 = arith.addf %379, %381 : vector<1x128xf32>
    %383 = arith.negf %382 : vector<1x128xf32>
    %384 = math.exp %383 : vector<1x128xf32>
    %cst_62 = arith.constant 1.000000e+00 : f32
    %385 = vector.broadcast %cst_62 : f32 to vector<1x128xf32>
    %386 = arith.addf %385, %384 : vector<1x128xf32>
    %387 = arith.divf %385, %386 : vector<1x128xf32>
    %388 = vector.extract_strided_slice %387 {offsets = [0, 0], sizes = [1, 32], strides = [1, 1]} : vector<1x128xf32> to vector<1x32xf32>
    %389 = vector.extract_strided_slice %387 {offsets = [0, 32], sizes = [1, 32], strides = [1, 1]} : vector<1x128xf32> to vector<1x32xf32>
    %390 = vector.extract_strided_slice %387 {offsets = [0, 96], sizes = [1, 32], strides = [1, 1]} : vector<1x128xf32> to vector<1x32xf32>
    %391 = vector.extract_strided_slice %382 {offsets = [0, 64], sizes = [1, 32], strides = [1, 1]} : vector<1x128xf32> to vector<1x32xf32>
    %392 = math.tanh %391 : vector<1x32xf32>
    %393 = arith.mulf %389, %374 : vector<1x32xf32>
    %394 = arith.mulf %388, %392 : vector<1x32xf32>
    %395 = arith.addf %393, %394 : vector<1x32xf32>
    %396 = math.tanh %395 : vector<1x32xf32>
    %397 = arith.mulf %390, %396 : vector<1x32xf32>
    %398 = vector.extract_strided_slice %250 {offsets = [0, 0], sizes = [1, 16], strides = [1, 1]} : vector<1x32xf32> to vector<1x16xf32>
    %399 = vector.extract_strided_slice %397 {offsets = [0, 16], sizes = [1, 16], strides = [1, 1]} : vector<1x32xf32> to vector<1x16xf32>
    %400 = tpu.concatenate %398, %399 in 1 : vector<1x16xf32>, vector<1x16xf32> -> vector<1x32xf32>
    %401 = vector.extract_strided_slice %271 {offsets = [0, 0], sizes = [1, 16], strides = [1, 1]} : vector<1x32xf32> to vector<1x16xf32>
    %402 = vector.extract_strided_slice %376 {offsets = [0, 16], sizes = [1, 16], strides = [1, 1]} : vector<1x32xf32> to vector<1x16xf32>
    %403 = tpu.concatenate %401, %402 in 1 : vector<1x16xf32>, vector<1x16xf32> -> vector<1x32xf32>
    %404 = vector.extract_strided_slice %292 {offsets = [0, 0], sizes = [1, 16], strides = [1, 1]} : vector<1x32xf32> to vector<1x16xf32>
    %405 = vector.extract_strided_slice %355 {offsets = [0, 16], sizes = [1, 16], strides = [1, 1]} : vector<1x32xf32> to vector<1x16xf32>
    %406 = tpu.concatenate %404, %405 in 1 : vector<1x16xf32>, vector<1x16xf32> -> vector<1x32xf32>
    %407 = vector.extract_strided_slice %313 {offsets = [0, 0], sizes = [1, 16], strides = [1, 1]} : vector<1x32xf32> to vector<1x16xf32>
    %408 = vector.extract_strided_slice %334 {offsets = [0, 16], sizes = [1, 16], strides = [1, 1]} : vector<1x32xf32> to vector<1x16xf32>
    %409 = tpu.concatenate %407, %408 in 1 : vector<1x16xf32>, vector<1x16xf32> -> vector<1x32xf32>
    %410 = vector.extract_strided_slice %334 {offsets = [0, 0], sizes = [1, 16], strides = [1, 1]} : vector<1x32xf32> to vector<1x16xf32>
    %411 = vector.extract_strided_slice %313 {offsets = [0, 16], sizes = [1, 16], strides = [1, 1]} : vector<1x32xf32> to vector<1x16xf32>
    %412 = tpu.concatenate %410, %411 in 1 : vector<1x16xf32>, vector<1x16xf32> -> vector<1x32xf32>
    %413 = vector.extract_strided_slice %355 {offsets = [0, 0], sizes = [1, 16], strides = [1, 1]} : vector<1x32xf32> to vector<1x16xf32>
    %414 = vector.extract_strided_slice %292 {offsets = [0, 16], sizes = [1, 16], strides = [1, 1]} : vector<1x32xf32> to vector<1x16xf32>
    %415 = tpu.concatenate %413, %414 in 1 : vector<1x16xf32>, vector<1x16xf32> -> vector<1x32xf32>
    %416 = vector.extract_strided_slice %376 {offsets = [0, 0], sizes = [1, 16], strides = [1, 1]} : vector<1x32xf32> to vector<1x16xf32>
    %417 = vector.extract_strided_slice %271 {offsets = [0, 16], sizes = [1, 16], strides = [1, 1]} : vector<1x32xf32> to vector<1x16xf32>
    %418 = tpu.concatenate %416, %417 in 1 : vector<1x16xf32>, vector<1x16xf32> -> vector<1x32xf32>
    %419 = vector.extract_strided_slice %397 {offsets = [0, 0], sizes = [1, 16], strides = [1, 1]} : vector<1x32xf32> to vector<1x16xf32>
    %420 = vector.extract_strided_slice %250 {offsets = [0, 16], sizes = [1, 16], strides = [1, 1]} : vector<1x32xf32> to vector<1x16xf32>
    %421 = tpu.concatenate %419, %420 in 1 : vector<1x16xf32>, vector<1x16xf32> -> vector<1x32xf32>
    %422 = tpu.concatenate %400, %403, %406, %409, %412, %415, %418, %421 in 0 : vector<1x32xf32>, vector<1x32xf32>, vector<1x32xf32>, vector<1x32xf32>, vector<1x32xf32>, vector<1x32xf32>, vector<1x32xf32>, vector<1x32xf32> -> vector<8x32xf32>
    %423 = arith.truncf %422 : vector<8x32xf32> to vector<8x32xbf16>
    %c0_63 = arith.constant 0 : index
    %c0_64 = arith.constant 0 : index
    %424 = vector.load %arg9[%c0_63, %c0_64] : memref<32x32xf32, #tpu.memory_space<vmem>>, vector<32x32xf32>
    %425 = arith.truncf %424 : vector<32x32xf32> to vector<32x32xbf16>
    %cst_65 = arith.constant dense<0.000000e+00> : vector<8x32xf32>
    %426 = tpu.matmul %423, %425, %cst_65 {dimension_numbers = #tpu.dot_dimension_numbers<[1], [0], [0], [1], [0, 0, 1, 1], [], []>} : vector<8x32xbf16>, vector<32x32xbf16>, vector<8x32xf32> -> vector<8x32xf32>
    %c0_66 = arith.constant 0 : index
    %c0_67 = arith.constant 0 : index
    %427 = vector.load %arg10[%c0_66, %c0_67] : memref<1x32xf32, #tpu.memory_space<vmem>>, vector<1x32xf32>
    %428 = vector.broadcast %427 : vector<1x32xf32> to vector<8x32xf32>
    %429 = arith.addf %426, %428 : vector<8x32xf32>
    %cst_68 = arith.constant 0.000000e+00 : f32
    %430 = vector.broadcast %cst_68 : f32 to vector<8x32xf32>
    %431 = arith.maximumf %429, %430 : vector<8x32xf32>
    %432 = arith.truncf %431 : vector<8x32xf32> to vector<8x32xbf16>
    %c0_69 = arith.constant 0 : index
    %c0_70 = arith.constant 0 : index
    %433 = vector.load %arg11[%c0_69, %c0_70] : memref<32x32xf32, #tpu.memory_space<vmem>>, vector<32x32xf32>
    %434 = arith.truncf %433 : vector<32x32xf32> to vector<32x32xbf16>
    %cst_71 = arith.constant dense<0.000000e+00> : vector<8x32xf32>
    %435 = tpu.matmul %432, %434, %cst_71 {dimension_numbers = #tpu.dot_dimension_numbers<[1], [0], [0], [1], [0, 0, 1, 1], [], []>} : vector<8x32xbf16>, vector<32x32xbf16>, vector<8x32xf32> -> vector<8x32xf32>
    %c0_72 = arith.constant 0 : index
    %c0_73 = arith.constant 0 : index
    %436 = vector.load %arg12[%c0_72, %c0_73] : memref<1x32xf32, #tpu.memory_space<vmem>>, vector<1x32xf32>
    %437 = vector.broadcast %436 : vector<1x32xf32> to vector<8x32xf32>
    %438 = arith.addf %435, %437 : vector<8x32xf32>
    %c0_74 = arith.constant 0 : index
    %c0_75 = arith.constant 0 : index
    %439 = vector.load %arg3[%c0_74, %c0_75] : memref<128x32xf32, #tpu.memory_space<vmem>>, vector<128x32xf32>
    %440 = tpu.concatenate %439, %438 in 0 : vector<128x32xf32>, vector<8x32xf32> -> vector<136x32xf32>
    %441 = arith.truncf %440 : vector<136x32xf32> to vector<136x32xbf16>
    %c0_76 = arith.constant 0 : index
    %c0_77 = arith.constant 0 : index
    %442 = vector.load %arg0[%c0_76, %c0_77] : memref<48x1xi32, #tpu.memory_space<vmem>>, vector<48x1xi32>
    %443 = tpu.iota {dimensions = array<i32: 1>} : vector<48x136xi32>
    %444 = vector.broadcast %442 : vector<48x1xi32> to vector<48x136xi32>
    %445 = arith.cmpi eq, %443, %444 : vector<48x136xi32>
    %cst_78 = arith.constant 1.000000e+00 : f32
    %cst_79 = arith.constant 0.000000e+00 : f32
    %446 = vector.broadcast %cst_78 : f32 to vector<48x136xf32>
    %447 = vector.broadcast %cst_79 : f32 to vector<48x136xf32>
    %448 = arith.select %445, %446, %447 : vector<48x136xi1>, vector<48x136xf32>
    %449 = arith.truncf %448 : vector<48x136xf32> to vector<48x136xbf16>
    %cst_80 = arith.constant dense<0.000000e+00> : vector<48x32xf32>
    %450 = tpu.matmul %449, %441, %cst_80 {dimension_numbers = #tpu.dot_dimension_numbers<[1], [0], [0], [1], [0, 0, 1, 1], [], []>} : vector<48x136xbf16>, vector<136x32xbf16>, vector<48x32xf32> -> vector<48x32xf32>
    %451 = arith.truncf %450 : vector<48x32xf32> to vector<48x32xbf16>
    %c0_81 = arith.constant 0 : index
    %c0_82 = arith.constant 0 : index
    %452 = vector.load %arg13[%c0_81, %c0_82] : memref<32x128xf32, #tpu.memory_space<vmem>>, vector<32x128xf32>
    %453 = arith.truncf %452 : vector<32x128xf32> to vector<32x128xbf16>
    %cst_83 = arith.constant dense<0.000000e+00> : vector<48x128xf32>
    %454 = tpu.matmul %451, %453, %cst_83 {dimension_numbers = #tpu.dot_dimension_numbers<[1], [0], [0], [1], [0, 0, 1, 1], [], []>} : vector<48x32xbf16>, vector<32x128xbf16>, vector<48x128xf32> -> vector<48x128xf32>
    %c0_84 = arith.constant 0 : index
    %c0_85 = arith.constant 0 : index
    %455 = vector.load %arg14[%c0_84, %c0_85] : memref<1x128xf32, #tpu.memory_space<vmem>>, vector<1x128xf32>
    %456 = vector.broadcast %455 : vector<1x128xf32> to vector<48x128xf32>
    %457 = arith.addf %454, %456 : vector<48x128xf32>
    %c0_86 = arith.constant 0 : index
    %c0_87 = arith.constant 0 : index
    %458 = vector.load %arg1[%c0_86, %c0_87] : memref<48x1xi32, #tpu.memory_space<vmem>>, vector<48x1xi32>
    %cst_88 = arith.constant dense<0xFF800000> : vector<48xf32>
    %459 = vector.multi_reduction <maximumf>, %457, %cst_88 [1] : vector<48x128xf32> to vector<48xf32>
    %460 = vector.shape_cast %459 : vector<48xf32> to vector<48x1xf32>
    %461 = vector.broadcast %460 : vector<48x1xf32> to vector<48x128xf32>
    %462 = arith.subf %457, %461 : vector<48x128xf32>
    %463 = math.exp %462 : vector<48x128xf32>
    %cst_89 = arith.constant dense<0.000000e+00> : vector<48xf32>
    %464 = vector.multi_reduction <add>, %463, %cst_89 [1] : vector<48x128xf32> to vector<48xf32>
    %465 = vector.shape_cast %464 : vector<48xf32> to vector<48x1xf32>
    %466 = math.log %465 : vector<48x1xf32>
    %467 = arith.addf %466, %460 : vector<48x1xf32>
    %468 = tpu.iota {dimensions = array<i32: 1>} : vector<48x128xi32>
    %469 = vector.broadcast %458 : vector<48x1xi32> to vector<48x128xi32>
    %470 = arith.cmpi eq, %468, %469 : vector<48x128xi32>
    %cst_90 = arith.constant 0.000000e+00 : f32
    %471 = vector.broadcast %cst_90 : f32 to vector<48x128xf32>
    %472 = arith.select %470, %457, %471 : vector<48x128xi1>, vector<48x128xf32>
    %cst_91 = arith.constant dense<0.000000e+00> : vector<48xf32>
    %473 = vector.multi_reduction <add>, %472, %cst_91 [1] : vector<48x128xf32> to vector<48xf32>
    %474 = vector.shape_cast %473 : vector<48xf32> to vector<48x1xf32>
    %c0_92 = arith.constant 0 : index
    %c0_93 = arith.constant 0 : index
    %475 = vector.load %arg2[%c0_92, %c0_93] : memref<48x1xf32, #tpu.memory_space<vmem>>, vector<48x1xf32>
    %476 = arith.subf %467, %474 : vector<48x1xf32>
    %477 = arith.mulf %475, %476 : vector<48x1xf32>
    %478 = vector.shape_cast %477 : vector<48x1xf32> to vector<1x48x1xf32>
    %cst_94 = arith.constant dense<0.000000e+00> : vector<1xf32>
    %479 = vector.multi_reduction <add>, %478, %cst_94 [1, 2] : vector<1x48x1xf32> to vector<1xf32>
    %480 = vector.shape_cast %479 : vector<1xf32> to vector<1x1x1xf32>
    %481 = vector.extract %480[0, 0, 0] : f32 from vector<1x1x1xf32>
    %482 = vector.broadcast %481 : f32 to vector<1x1xf32>
    %cst_95 = arith.constant 5.000000e-01 : f32
    %483 = vector.broadcast %cst_95 : f32 to vector<1x1xf32>
    %484 = arith.mulf %482, %483 : vector<1x1xf32>
    %c0_96 = arith.constant 0 : index
    %c0_97 = arith.constant 0 : index
    %485 = vector.load %arg15[%c0_96, %c0_97] : memref<1x1xf32, #tpu.memory_space<vmem>>, vector<1x1xf32>
    tpu.vector_store %arg15[%c0_96, %c0_97], %484 {strides = array<i32>} : memref<1x1xf32, #tpu.memory_space<vmem>>, vector<1x1xf32>,
    return
  }
}

</mosaic_0001>

<bundles_post_ra>
// kernel: tpu_custom_call.1
= control target key start
LH: loop header
LB: loop body
LE: loop exit
PB: predicated region body
PF: predicated region fallthrough
CT: control target
= control target key end

     0   :  { %20 = vsyncpa [#allocation3], 0  ;;  %s3687_s0 = inlined_call_operand.vmem [shape: s32[48,1], index: 0, kind: input, shape index: {}]   ;;  %s3688_s1 = inlined_call_operand.vmem [shape: s32[48,1], index: 1, kind: input, shape index: {}]   ;;  %s3689_s2 = inlined_call_operand.vmem [shape: f32[48,1], index: 2, kind: input, shape index: {}]   ;;  %s3690_s3 = inlined_call_operand.vmem [shape: f32[128,32], index: 3, kind: input, shape index: {}]   ;;  %s3691_s4 = inlined_call_operand.hbm [shape: f32[8,32], index: 4, kind: input, shape index: {}]   ;;  %s3692_s5 = inlined_call_operand.vmem [shape: f32[2,32,128], index: 5, kind: input, shape index: {}]   ;;  %s3693_s6 = inlined_call_operand.vmem [shape: f32[2,32,128], index: 6, kind: input, shape index: {}]   ;;  %s3694_s7 = inlined_call_operand.vmem [shape: f32[2,32,128], index: 7, kind: input, shape index: {}]   ;;  %s3695_s8 = inlined_call_operand.vmem [shape: f32[2,1,128], index: 8, kind: input, shape index: {}]   ;;  %s3696_s9 = inlined_call_operand.vmem [shape: f32[32,32], index: 9, kind: input, shape index: {}]   ;;  %s3697_s10 = inlined_call_operand.vmem [shape: f32[1,32], index: 10, kind: input, shape index: {}]   ;;  %s3698_s11 = inlined_call_operand.vmem [shape: f32[32,32], index: 11, kind: input, shape index: {}]   ;;  %s3699_s12 = inlined_call_operand.vmem [shape: f32[1,32], index: 12, kind: input, shape index: {}]   ;;  %s3700_s13 = inlined_call_operand.vmem [shape: f32[32,128], index: 13, kind: input, shape index: {}]   ;;  %s3701_s14 = inlined_call_operand.vmem [shape: f32[1,128], index: 14, kind: input, shape index: {}]   ;;  %s3702_s15 = inlined_call_operand.hbm [shape: f32[1,1], index: 15, kind: output, shape index: {}]  }
   0x1   :  { %21 = vsyncpa [#allocation4], 0  ;;  %s2863_s18 = smov [#allocation2]   ;;  %s2815_s22 = scalar_lea.hbm %s3691_s4, 128 }
   0x2   :  { %s36_s19 = sshll.u32 %s2863_s18, 4  ;;  %p2816_p0 = scmp.ne.s32.totalorder %s3691_s4, %s2815_s22  ;;  %s37_s19 = int_to_ptr.vmem [resolvable:$true] %s36_s19 }
   0x3   :  { %p2819_p1 = scmp.lt.u32.totalorder %s2815_s22, %s3691_s4 }
   0x5   :  { %p2821_p2 = pnand %p2819_p1, %p2816_p0 }
   0x7   :  { %2824 = shalt.err (!%p2821_p2)
}
   0x8   :  { %s2825_s27 = scalar_lea.vmem %s37_s19, 128  ;;  %p2830_p4 = scmp.lt.s32.totalorder %s37_s19, %s37_s19 }
   0x9   :  { %p2826_p3 = scmp.ne.s32.totalorder %s37_s19, %s2825_s27  ;;  %p2831_p5 = scmp.lt.s32.totalorder %s2825_s27, %s2825_s27 }
   0xb   :  { %p2832_p6 = por %p2831_p5, %p2830_p4 }
   0xd   :  { %p2833_p7 = pnand %p2832_p6, %p2826_p3 }
   0xf   :  { %2836 = shalt.err (!%p2833_p7)
}
  0x10   :  { %39 = dma.hbm_to_vmem [thread:$0]  %s3691_s4, 128, %s37_s19, [#allocation3]  }
  0x11   :  { %2859 = dma.done.wait [#allocation3], 128  }
  0x12   :  { %2860 = vsyncadd [#allocation3], 4294967168  ;;  %v2864_v0 = vmov 0.0   ;;  %vm2865_vm0 = vmmov 0   ;;  %v2866_v1 = vmov 0   ;;  %v66_v2 = vld [vmem:[%s3692_s5] sm:$0xff] }
  0x13   :  { %2379 = vmatprep.subr.bf16.mxu1 %v2864_v0  ;;  %2383 = vmatprep.mubr.msk.bf16.mxu1 %vm2865_vm0, %v2864_v0  ;;  %v67_v3 = vld [vmem:[%s3692_s5 + $0x8] sm:$0xff]  ;;  %v68_v4 = vld [vmem:[%s3692_s5 + $0x10] sm:$0xff]  ;;  %v69_v6 = vld [vmem:[%s3692_s5 + $0x18] sm:$0xff]  ;;  %vm79_vm1 = vcmask 261120   ;;  %s2867_s24 = smov 64   ;;  %s2868_s25 = smov 32  }
  0x14   :  { %2411 = vmatprep.subr.bf16.mxu0 %v2864_v0  ;;  %2415 = vmatprep.mubr.msk.bf16.mxu0 %vm2865_vm0, %v2864_v0  ;;  %v70_v5 = vpack.c.bf16 %v67_v3, %v66_v2  ;;  %v71_v7 = vpack.c.bf16 %v69_v6, %v68_v4  ;;  %v64_v8 = vld [vmem:[#allocation2] sm:$0xff]  ;;  %v169_v9 = vld [vmem:[%s3694_s7] sm:$0xff]  ;;  %v170_v10 = vld [vmem:[%s3694_s7 + $0x8] sm:$0xff]  ;;  %vm822_vm2 = vcmask 130048   ;;  %vm886_vm3 = vcmask 1040384  }
  0x15   :  { %2662 = vset.pattern.permute.xlu1 %v2866_v1  ;;  %2661 = vset.pattern.permute.xlu0 %v2866_v1  ;;  %v123_v11 = vld [vmem:[%s3693_s6] sm:$0xff]  ;;  %v124_v12 = vld [vmem:[%s3693_s6 + $0x8] sm:$0xff]  ;;  %v2996_v13 = vpack.c.bf16 %v170_v10, %v169_v9  ;;  %v171_v14 = vld [vmem:[%s3694_s7 + $0x10] sm:$0xff]  ;;  %v65_v16 = vpack.c.bf16 %v64_v8, %v64_v8  ;;  %vm888_vm4 = vcmask 1041408   ;;  %vm890_vm5 = vcmask 1042432  }
  0x16   :  { %2380 = vmatpush3.bf16.msra.mxu1 %v70_v5  ;;  %v172_v15 = vld [vmem:[%s3694_s7 + $0x18] sm:$0xff]  ;;  %v127_v17 = vpack.c.bf16 %v124_v12, %v123_v11  ;;  %v125_v18 = vld [vmem:[%s3693_s6 + $0x10] sm:$0xff]  ;;  %v2242_v26 = vld [vmem:[%s3695_s8] ss:$0 sm:$0xff]  ;;  %vm892_vm6 = vcmask 1043456   ;;  %vm894_vm7 = vcmask 1044480  }
  0x17   :  { %2381 = vmatprep.subr.bf16.mxu1 %v2864_v0  ;;  %2412 = vmatpush3.bf16.msra.mxu0 %v2996_v13  ;;  %v126_v19 = vld [vmem:[%s3693_s6 + $0x18] sm:$0xff]  ;;  %v3013_v20 = vpack.c.bf16 %v172_v15, %v171_v14  ;;  %vm896_vm8 = vcmask 1045504   ;;  %vm898_vm9 = vcmask 1046528   ;;  %vm1924_vm15 = vcmask 64512  }
  0x18   :  { %2413 = vmatprep.subr.bf16.mxu0 %v2864_v0  ;;  %v128_v21 = vpack.c.bf16 %v126_v19, %v125_v18 }
  0x1a   :  { %2382 = vmatpush3.bf16.msra.mxu1 %v71_v7 }
  0x1b   :  { %2387 = vmatprep.subr.bf16.mxu1 %v2864_v0  ;;  %2414 = vmatpush3.bf16.msra.mxu0 %v3013_v20 }
  0x1c   :  { %2427 = vmatprep.subr.bf16.mxu0 %v2864_v0 }
  0x1d   :  { %2384 = vmatmul.mubr.msk.bf16.vlgmr.msra.gmra.mrb[0].mxu1 %vm79_vm1, %v65_v16 }
  0x1e   :  { %2388 = vmatpush3.bf16.msra.mxu1 %v127_v17  ;;  %2391 = vmatprep.mubr.msk.bf16.mxu1 %vm2865_vm0, %v2864_v0 }
  0x1f   :  { %2389 = vmatprep.subr.bf16.mxu1 %v2864_v0 }
  0x22   :  { %2390 = vmatpush3.bf16.msra.mxu1 %v128_v21 }
  0x23   :  { %2395 = vmatprep.subr.bf16.mxu1 %v2864_v0 }
  0x25   :  { %2392 = vmatmul.mubr.msk.bf16.vlgmr.msra.gmra.mrb[4].mxu1 %vm79_vm1, %v65_v16 }
  0x26   :  { %2396 = vmatpush3.bf16.msra.mxu1 %v2996_v13  ;;  %2399 = vmatprep.mubr.msk.bf16.mxu1 %vm2865_vm0, %v2864_v0 }
  0x27   :  { %2397 = vmatprep.subr.bf16.mxu1 %v2864_v0 }
  0x2a   :  { %2398 = vmatpush3.bf16.msra.mxu1 %v3013_v20 }
  0x2b   :  { %2403 = vmatprep.subr.bf16.mxu1 %v2864_v0 }
  0x2d   :  { %2400 = vmatmul.mubr.bf16.vlgmr.msra.gmra.mrb[8].mxu1 %v2866_v1 }
  0x2e   :  { %2404 = vmatpush3.bf16.msra.mxu1 %v2996_v13  ;;  %2407 = vmatprep.mubr.msk.bf16.mxu1 %vm2865_vm0, %v2864_v0 }
  0x2f   :  { %2405 = vmatprep.subr.bf16.mxu1 %v2864_v0 }
  0x32   :  { %2406 = vmatpush3.bf16.msra.mxu1 %v3013_v20 }
  0x33   :  { %2419 = vmatprep.subr.bf16.mxu1 %v2864_v0 }
  0xf0   :  { %v117_v22 = vpop.f32.mrb[0].mxu1 }
  0xf1   :  { %v2385_v23 = vpop.f32.mrb[1].mxu1  ;;  %v118_v27 = vadd.f32 %v2242_v26, %v117_v22 }
  0xf2   :  { %v120_v24 = vpop.f32.mrb[2].mxu1 }
  0xf3   :  { %v2386_v25 = vpop.f32.mrb[3].mxu1 }
  0xf8   :  { %v163_v28 = vpop.f32.mrb[4].mxu1 }
  0xf9   :  { %v247_v29 = vrot.slane %v163_v28, 5  ;;  %v328_v30 = vrot.slane %v163_v28, 3  ;;  %v411_v31 = vrot.slane %v163_v28, 1  ;;  %v2393_v32 = vpop.f32.mrb[5].mxu1  ;;  %v176_v33 = vrot.slane %v163_v28, 7 }
  0xfa   :  { %v166_v34 = vpop.f32.mrb[6].mxu1 }
  0xfb   :  { %v2394_v35 = vpop.f32.mrb[7].mxu1  ;;  %v3039_v36 = vadd.f32 %v176_v33, %v118_v27  ;;  %v3041_v37 = vadd.f32 %v247_v29, %v118_v27  ;;  %v3043_v38 = vadd.f32 %v328_v30, %v118_v27  ;;  %v3045_v39 = vadd.f32 %v411_v31, %v118_v27 }
 0x100   :  { %v216_v40 = vpop.f32.mrb[8].mxu1 }
 0x101   :  { %v222_v41 = vadd.f32 %v216_v40, %v3039_v36  ;;  %v2401_v42 = vpop.f32.mrb[9].mxu1 }
 0x102   :  { %v219_v43 = vpop.f32.mrb[10].mxu1 }
 0x103   :  { %2663 = vtanh.f32 %v222_v41  ;;  %v2402_v44 = vpop.f32.mrb[11].mxu1  ;;  %v2245_v46 = vmul.f32 -1.442695, %v222_v41 }
 0x105   :  { %2665 = vpow2.f32 %v2245_v46 }
 0x10d   :  { %v2664_v45 = vpop.eup %2663 }
 0x10e   :  { %232 = vrot.lane.b32.xlu0 %v2664_v45, %s2867_s24 }
 0x10f   :  { %v2666_v47 = vpop.eup %2665 }
 0x110   :  { %v226_v48 = vadd.f32 1.0, %v2666_v47 }
 0x112   :  { %2667 = vrcp.f32 %v226_v48 }
 0x11c   :  { %v2668_v49 = vpop.eup %2667 }
 0x11d   :  { %v230_v52 = vmul.f32 0.0, %v2668_v49 }
 0x180   :  { %v233_v50 = vpop.permute.xlu0 %232 }
 0x181   :  { %v235_v51 = vmul.f32 %v2668_v49, %v233_v50 }
 0x183   :  { %237 = vrot.lane.b32.xlu0 %v235_v51, %s2868_s25 }
 0x1f5   :  { %v238_v53 = vpop.permute.xlu0 %237 }
 0x1f6   :  { %v240_v54 = vadd.f32 %v238_v53, %v230_v52 }
 0x1f8   :  { %2669 = vtanh.f32 %v240_v54  ;;  %v309_v11 = vrot.slane %v240_v54, 7 }
 0x202   :  { %v2670_v55 = vpop.eup %2669 }
 0x203   :  { %243 = vrot.lane.b32.xlu1 %v2670_v55, %s2867_s24 }
 0x275   :  { %v244_v56 = vpop.permute.xlu1 %243 }
 0x276   :  { %v3051_v57 = vmul.f32 %v2668_v49, %v244_v56 }
 0x278   :  { %v250_v58 = vpack.c.bf16 %v3051_v57, %v3051_v57 }
 0x27a   :  { %252 = vrot.lane.b32.xlu1 %v250_v58, %s2868_s25 }
 0x2ec   :  { %v253_v59 = vpop.permute.xlu1 %252 }
 0x2ed   :  { %2408 = vmatmul.mubr.msk.bf16.vlgmr.msra.gmra.mrb[12].mxu1 %vm79_vm1, %v253_v59 }
 0x2ee   :  { %2420 = vmatpush3.bf16.msra.mxu1 %v2996_v13  ;;  %2423 = vmatprep.mubr.msk.bf16.mxu1 %vm2865_vm0, %v2864_v0 }
 0x2ef   :  { %2421 = vmatprep.subr.bf16.mxu1 %v2864_v0 }
 0x2f2   :  { %2422 = vmatpush3.bf16.msra.mxu1 %v3013_v20 }
 0x2f3   :  { %2435 = vmatprep.subr.bf16.mxu1 %v2864_v0 }
 0x3c0   :  { %v291_v60 = vpop.f32.mrb[12].mxu1 }
 0x3c1   :  { %v298_v61 = vrot.slane %v291_v60, 7  ;;  %v2409_v62 = vpop.f32.mrb[13].mxu1 }
 0x3c2   :  { %v294_v63 = vpop.f32.mrb[14].mxu1 }
 0x3c3   :  { %v300_v2 = vadd.f32 %v298_v61, %v3041_v37  ;;  %v2410_v3 = vpop.f32.mrb[15].mxu1 }
 0x3c5   :  { %2671 = vtanh.f32 %v300_v2  ;;  %v2247_v5 = vmul.f32 -1.442695, %v300_v2 }
 0x3c7   :  { %2673 = vpow2.f32 %v2247_v5 }
 0x3cf   :  { %v2672_v4 = vpop.eup %2671 }
 0x3d0   :  { %313 = vrot.lane.b32.xlu0 %v2672_v4, %s2867_s24 }
 0x3d1   :  { %v2674_v6 = vpop.eup %2673 }
 0x3d2   :  { %v304_v7 = vadd.f32 1.0, %v2674_v6 }
 0x3d4   :  { %2675 = vrcp.f32 %v304_v7 }
 0x3de   :  { %v2676_v8 = vpop.eup %2675 }
 0x3df   :  { %v311_v12 = vmul.f32 %v2676_v8, %v309_v11 }
 0x442   :  { %v314_v9 = vpop.permute.xlu0 %313 }
 0x443   :  { %v316_v10 = vmul.f32 %v2676_v8, %v314_v9 }
 0x445   :  { %318 = vrot.lane.b32.xlu1 %v316_v10, %s2868_s25 }
 0x4b7   :  { %v319_v14 = vpop.permute.xlu1 %318 }
 0x4b8   :  { %v321_v15 = vadd.f32 %v319_v14, %v311_v12 }
 0x4ba   :  { %2677 = vtanh.f32 %v321_v15  ;;  %v392_v40 = vrot.slane %v321_v15, 7 }
 0x4c4   :  { %v2678_v16 = vpop.eup %2677 }
 0x4c5   :  { %324 = vrot.lane.b32.xlu0 %v2678_v16, %s2867_s24 }
 0x537   :  { %v325_v17 = vpop.permute.xlu0 %324 }
 0x538   :  { %v3067_v18 = vmul.f32 %v2676_v8, %v325_v17 }
 0x53a   :  { %v331_v19 = vpack.c.bf16 %v3067_v18, %v3067_v18 }
 0x53c   :  { %v333_v21 = vshrl.u32 %v331_v19, 16 }
 0x53e   :  { %335 = vrot.lane.b32.xlu1 %v333_v21, %s2868_s25 }
 0x5b0   :  { %v336_v22 = vpop.permute.xlu1 %335 }
 0x5b1   :  { %2416 = vmatmul.mubr.msk.bf16.vlgmr.msra.gmra.mrb[0].mxu0 %vm79_vm1, %v336_v22 }
 0x5b2   :  { %2428 = vmatpush3.bf16.msra.mxu0 %v2996_v13  ;;  %2431 = vmatprep.mubr.msk.bf16.mxu0 %vm2865_vm0, %v2864_v0 }
 0x5b3   :  { %2429 = vmatprep.subr.bf16.mxu0 %v2864_v0 }
 0x5b6   :  { %2430 = vmatpush3.bf16.msra.mxu0 %v3013_v20 }
 0x5b7   :  { %2443 = vmatprep.subr.bf16.mxu0 %v2864_v0 }
 0x684   :  { %v374_v23 = vpop.f32.mrb[0].mxu0 }
 0x685   :  { %v381_v24 = vrot.slane %v374_v23, 6  ;;  %v2417_v25 = vpop.f32.mrb[1].mxu0 }
 0x686   :  { %v377_v26 = vpop.f32.mrb[2].mxu0 }
 0x687   :  { %v383_v27 = vadd.f32 %v381_v24, %v3043_v38  ;;  %v2418_v28 = vpop.f32.mrb[3].mxu0 }
 0x689   :  { %2679 = vtanh.f32 %v383_v27  ;;  %v2249_v30 = vmul.f32 -1.442695, %v383_v27 }
 0x68b   :  { %2681 = vpow2.f32 %v2249_v30 }
 0x693   :  { %v2680_v29 = vpop.eup %2679 }
 0x694   :  { %396 = vrot.lane.b32.xlu0 %v2680_v29, %s2867_s24 }
 0x695   :  { %v2682_v31 = vpop.eup %2681 }
 0x696   :  { %v387_v32 = vadd.f32 1.0, %v2682_v31 }
 0x698   :  { %2683 = vrcp.f32 %v387_v32 }
 0x6a2   :  { %v2684_v33 = vpop.eup %2683 }
 0x6a3   :  { %v394_v41 = vmul.f32 %v2684_v33, %v392_v40 }
 0x706   :  { %v397_v34 = vpop.permute.xlu0 %396 }
 0x707   :  { %v399_v35 = vmul.f32 %v2684_v33, %v397_v34 }
 0x709   :  { %401 = vrot.lane.b32.xlu1 %v399_v35, %s2868_s25 }
 0x77b   :  { %v402_v42 = vpop.permute.xlu1 %401 }
 0x77c   :  { %v404_v43 = vadd.f32 %v402_v42, %v394_v41 }
 0x77e   :  { %2685 = vtanh.f32 %v404_v43  ;;  %v474_v2 = vrot.slane %v404_v43, 7 }
 0x788   :  { %v2686_v44 = vpop.eup %2685 }
 0x789   :  { %407 = vrot.lane.b32.xlu0 %v2686_v44, %s2867_s24 }
 0x7fb   :  { %v408_v45 = vpop.permute.xlu0 %407 }
 0x7fc   :  { %v3083_v46 = vmul.f32 %v2684_v33, %v408_v45 }
 0x7fe   :  { %v414_v47 = vpack.c.bf16 %v3083_v46, %v3083_v46 }
 0x800   :  { %v416_v48 = vrot.slane %v414_v47, 1 }
 0x802   :  { %417 = vrot.lane.b32.xlu1 %v416_v48, %s2868_s25 }
 0x874   :  { %v418_v49 = vpop.permute.xlu1 %417 }
 0x875   :  { %2424 = vmatmul.mubr.msk.bf16.vlgmr.msra.gmra.mrb[16].mxu1 %vm79_vm1, %v418_v49 }
 0x876   :  { %2436 = vmatpush3.bf16.msra.mxu1 %v2996_v13  ;;  %2439 = vmatprep.mubr.msk.bf16.mxu1 %vm2865_vm0, %v2864_v0 }
 0x877   :  { %2437 = vmatprep.subr.bf16.mxu1 %v2864_v0 }
 0x87a   :  { %2438 = vmatpush3.bf16.msra.mxu1 %v3013_v20 }
 0x87b   :  { %2451 = vmatprep.subr.bf16.mxu1 %v2864_v0 }
 0x948   :  { %v456_v50 = vpop.f32.mrb[16].mxu1 }
 0x949   :  { %v463_v51 = vrot.slane %v456_v50, 5  ;;  %v2425_v52 = vpop.f32.mrb[17].mxu1 }
 0x94a   :  { %v459_v53 = vpop.f32.mrb[18].mxu1 }
 0x94b   :  { %v465_v54 = vadd.f32 %v463_v51, %v3045_v39  ;;  %v2426_v55 = vpop.f32.mrb[19].mxu1 }
 0x94d   :  { %2687 = vtanh.f32 %v465_v54  ;;  %v2251_v58 = vmul.f32 -1.442695, %v465_v54 }
 0x94f   :  { %2689 = vpow2.f32 %v2251_v58 }
 0x957   :  { %v2688_v56 = vpop.eup %2687 }
 0x958   :  { %478 = vrot.lane.b32.xlu0 %v2688_v56, %s2867_s24 }
 0x959   :  { %v2690_v59 = vpop.eup %2689 }
 0x95a   :  { %v469_v60 = vadd.f32 1.0, %v2690_v59 }
 0x95c   :  { %2691 = vrcp.f32 %v469_v60 }
 0x966   :  { %v2692_v61 = vpop.eup %2691 }
 0x967   :  { %v476_v3 = vmul.f32 %v2692_v61, %v474_v2 }
 0x9ca   :  { %v479_v62 = vpop.permute.xlu0 %478 }
 0x9cb   :  { %v481_v63 = vmul.f32 %v2692_v61, %v479_v62 }
 0x9cd   :  { %483 = vrot.lane.b32.xlu1 %v481_v63, %s2868_s25 }
 0xa3f   :  { %v484_v4 = vpop.permute.xlu1 %483 }
 0xa40   :  { %v486_v5 = vadd.f32 %v484_v4, %v476_v3 }
 0xa42   :  { %2693 = vtanh.f32 %v486_v5  ;;  %v555_v29 = vrot.slane %v486_v5, 7 }
 0xa4c   :  { %v2694_v6 = vpop.eup %2693 }
 0xa4d   :  { %489 = vrot.lane.b32.xlu0 %v2694_v6, %s2867_s24 }
 0xabf   :  { %v490_v7 = vpop.permute.xlu0 %489 }
 0xac0   :  { %v3099_v8 = vmul.f32 %v2692_v61, %v490_v7 }
 0xac2   :  { %v493_v9 = vpack.c.bf16 %v3099_v8, %v3099_v8 }
 0xac4   :  { %v495_v10 = vshrl.u32 %v493_v9, 16 }
 0xac6   :  { %v497_v11 = vrot.slane %v495_v10, 1 }
 0xac8   :  { %498 = vrot.lane.b32.xlu1 %v497_v11, %s2868_s25 }
 0xb3a   :  { %v499_v12 = vpop.permute.xlu1 %498 }
 0xb3b   :  { %2432 = vmatmul.mubr.msk.bf16.vlgmr.msra.gmra.mrb[4].mxu0 %vm79_vm1, %v499_v12 }
 0xb3c   :  { %2444 = vmatpush3.bf16.msra.mxu0 %v2996_v13  ;;  %2447 = vmatprep.mubr.msk.bf16.mxu0 %vm2865_vm0, %v2864_v0 }
 0xb3d   :  { %2445 = vmatprep.subr.bf16.mxu0 %v2864_v0 }
 0xb40   :  { %2446 = vmatpush3.bf16.msra.mxu0 %v3013_v20 }
 0xb41   :  { %2459 = vmatprep.subr.bf16.mxu0 %v2864_v0 }
 0xc0e   :  { %v537_v14 = vpop.f32.mrb[4].mxu0 }
 0xc0f   :  { %v544_v15 = vrot.slane %v537_v14, 4  ;;  %v2433_v16 = vpop.f32.mrb[5].mxu0 }
 0xc10   :  { %v540_v17 = vpop.f32.mrb[6].mxu0 }
 0xc11   :  { %v546_v19 = vadd.f32 %v544_v15, %v3039_v36  ;;  %v2434_v21 = vpop.f32.mrb[7].mxu0 }
 0xc13   :  { %2695 = vtanh.f32 %v546_v19  ;;  %v2253_v23 = vmul.f32 -1.442695, %v546_v19 }
 0xc15   :  { %2697 = vpow2.f32 %v2253_v23 }
 0xc1d   :  { %v2696_v22 = vpop.eup %2695 }
 0xc1e   :  { %559 = vrot.lane.b32.xlu0 %v2696_v22, %s2867_s24 }
 0xc1f   :  { %v2698_v24 = vpop.eup %2697 }
 0xc20   :  { %v550_v25 = vadd.f32 1.0, %v2698_v24 }
 0xc22   :  { %2699 = vrcp.f32 %v550_v25 }
 0xc2c   :  { %v2700_v26 = vpop.eup %2699 }
 0xc2d   :  { %v557_v30 = vmul.f32 %v2700_v26, %v555_v29 }
 0xc90   :  { %v560_v27 = vpop.permute.xlu0 %559 }
 0xc91   :  { %v562_v28 = vmul.f32 %v2700_v26, %v560_v27 }
 0xc93   :  { %564 = vrot.lane.b32.xlu1 %v562_v28, %s2868_s25 }
 0xd05   :  { %v565_v31 = vpop.permute.xlu1 %564 }
 0xd06   :  { %v567_v32 = vadd.f32 %v565_v31, %v557_v30 }
 0xd08   :  { %2701 = vtanh.f32 %v567_v32  ;;  %v634_v54 = vrot.slane %v567_v32, 7 }
 0xd12   :  { %v2702_v36 = vpop.eup %2701 }
 0xd13   :  { %570 = vrot.lane.b32.xlu0 %v2702_v36, %s2867_s24 }
 0xd85   :  { %v571_v33 = vpop.permute.xlu0 %570 }
 0xd86   :  { %v3115_v34 = vmul.f32 %v2700_v26, %v571_v33 }
 0xd88   :  { %v574_v35 = vpack.c.bf16 %v3115_v34, %v3115_v34 }
 0xd8a   :  { %v576_v40 = vrot.slane %v574_v35, 2 }
 0xd8c   :  { %577 = vrot.lane.b32.xlu1 %v576_v40, %s2868_s25 }
 0xdfe   :  { %v578_v41 = vpop.permute.xlu1 %577 }
 0xdff   :  { %2440 = vmatmul.mubr.msk.bf16.vlgmr.msra.gmra.mrb[20].mxu1 %vm79_vm1, %v578_v41 }
 0xe00   :  { %2452 = vmatpush3.bf16.msra.mxu1 %v2996_v13  ;;  %2455 = vmatprep.mubr.msk.bf16.mxu1 %vm2865_vm0, %v2864_v0 }
 0xe01   :  { %2453 = vmatprep.subr.bf16.mxu1 %v2864_v0 }
 0xe04   :  { %2454 = vmatpush3.bf16.msra.mxu1 %v3013_v20 }
 0xe05   :  { %2467 = vmatprep.subr.bf16.mxu1 %v2864_v0 }
 0xed2   :  { %v616_v42 = vpop.f32.mrb[20].mxu1 }
 0xed3   :  { %v623_v43 = vrot.slane %v616_v42, 3  ;;  %v2441_v44 = vpop.f32.mrb[21].mxu1 }
 0xed4   :  { %v619_v45 = vpop.f32.mrb[22].mxu1 }
 0xed5   :  { %v625_v47 = vadd.f32 %v623_v43, %v3041_v37  ;;  %v2442_v48 = vpop.f32.mrb[23].mxu1 }
 0xed7   :  { %2703 = vtanh.f32 %v625_v47  ;;  %v2255_v13 = vmul.f32 -1.442695, %v625_v47 }
 0xed9   :  { %2705 = vpow2.f32 %v2255_v13 }
 0xee1   :  { %v2704_v49 = vpop.eup %2703 }
 0xee2   :  { %638 = vrot.lane.b32.xlu0 %v2704_v49, %s2867_s24 }
 0xee3   :  { %v2706_v50 = vpop.eup %2705 }
 0xee4   :  { %v629_v51 = vadd.f32 1.0, %v2706_v50 }
 0xee6   :  { %2707 = vrcp.f32 %v629_v51 }
 0xef0   :  { %v2708_v52 = vpop.eup %2707 }
 0xef1   :  { %v636_v55 = vmul.f32 %v2708_v52, %v634_v54 }
 0xf54   :  { %v639_v20 = vpop.permute.xlu0 %638 }
 0xf55   :  { %v641_v53 = vmul.f32 %v2708_v52, %v639_v20  ;;  %v849_v20 = vrot.slane %v3115_v34, 1 }
 0xf57   :  { %643 = vrot.lane.b32.xlu1 %v641_v53, %s2868_s25  ;;  %v2591_v54 = vpack.i.bf16 %v849_v20, %v3099_v8  ;;  %v2273_v20 = vld [vmem:[%s3694_s7 + $0x28] sm:$0xff] }
 0xfc9   :  { %v644_v56 = vpop.permute.xlu1 %643 }
 0xfca   :  { %v646_v58 = vadd.f32 %v644_v56, %v636_v55  ;;  %v865_v55 = vrot.slane %v3083_v46, 5 }
 0xfcc   :  { %2709 = vtanh.f32 %v646_v58  ;;  %v715_v19 = vrot.slane %v646_v58, 7  ;;  %v2260_v58 = vld [vmem:[%s3692_s5 + $0x20] sm:$0xff] }
 0xfd6   :  { %v2710_v37 = vpop.eup %2709 }
 0xfd7   :  { %649 = vrot.lane.b32.xlu0 %v2710_v37, %s2867_s24  ;;  %v2261_v37 = vld [vmem:[%s3692_s5 + $0x28] sm:$0xff] }
0x1049   :  { %v650_v59 = vpop.permute.xlu0 %649 }
0x104a   :  { %v3131_v60 = vmul.f32 %v2708_v52, %v650_v59  ;;  %v2267_v59 = vld [vmem:[%s3693_s6 + $0x20] sm:$0xff] }
0x104c   :  { %v653_v61 = vpack.c.bf16 %v3131_v60, %v3131_v60  ;;  %v839_v45 = vrot.slane %v3131_v60, 3  ;;  %v2606_v56 = vpack.i.bf16 %v865_v55, %v3131_v60  ;;  %v881_v60 = vrot.slane %v3051_v57, 1 }
0x104e   :  { %v655_v62 = vshrl.u32 %v653_v61, 16  ;;  %v2586_v48 = vpack.i.bf16 %v839_v45, %v3083_v46  ;;  %v2268_v46 = vld [vmem:[%s3693_s6 + $0x28] sm:$0xff] }
0x1050   :  { %v657_v63 = vrot.slane %v655_v62, 2  ;;  %v906_v62 = vpack.c.bf16 %v2261_v37, %v2260_v58 }
0x1052   :  { %658 = vrot.lane.b32.xlu1 %v657_v63, %s2868_s25 }
0x10c4   :  { %v659_v2 = vpop.permute.xlu1 %658 }
0x10c5   :  { %2448 = vmatmul.mubr.msk.bf16.vlgmr.msra.gmra.mrb[8].mxu0 %vm79_vm1, %v659_v2  ;;  %v964_v2 = vpack.c.bf16 %v2268_v46, %v2267_v59 }
0x10c6   :  { %2463 = vmatprep.mubr.msk.bf16.mxu0 %vm2865_vm0, %v2864_v0  ;;  %2460 = vmatpush3.bf16.msra.mxu0 %v906_v62  ;;  %v2275_v62 = vld [vmem:[%s3694_s7 + $0x38] sm:$0xff] }
0x10c7   :  { %2461 = vmatprep.subr.bf16.mxu0 %v2864_v0 }
0x1198   :  { %v697_v3 = vpop.f32.mrb[8].mxu0 }
0x1199   :  { %v704_v4 = vrot.slane %v697_v3, 2  ;;  %v2449_v5 = vpop.f32.mrb[9].mxu0 }
0x119a   :  { %v700_v6 = vpop.f32.mrb[10].mxu0  ;;  %v2262_v5 = vld [vmem:[%s3692_s5 + $0x30] sm:$0xff] }
0x119b   :  { %v706_v7 = vadd.f32 %v704_v4, %v3043_v38  ;;  %v2450_v9 = vpop.f32.mrb[11].mxu0  ;;  %v2263_v6 = vld [vmem:[%s3692_s5 + $0x38] sm:$0xff] }
0x119c   :  { %v907_v9 = vpack.c.bf16 %v2263_v6, %v2262_v5 }
0x119d   :  { %2711 = vtanh.f32 %v706_v7  ;;  %v2257_v11 = vmul.f32 -1.442695, %v706_v7  ;;  %v2269_v7 = vld [vmem:[%s3693_s6 + $0x30] sm:$0xff] }
0x119e   :  { %2462 = vmatpush3.bf16.msra.mxu0 %v907_v9 }
0x119f   :  { %2713 = vpow2.f32 %v2257_v11  ;;  %2475 = vmatprep.subr.bf16.mxu0 %v2864_v0 }
0x11a7   :  { %v2712_v10 = vpop.eup %2711 }
0x11a8   :  { %719 = vrot.lane.b32.xlu0 %v2712_v10, %s2867_s24  ;;  %v2270_v10 = vld [vmem:[%s3693_s6 + $0x38] sm:$0xff] }
0x11a9   :  { %v2714_v12 = vpop.eup %2713 }
0x11aa   :  { %v710_v14 = vadd.f32 1.0, %v2714_v12  ;;  %v965_v12 = vpack.c.bf16 %v2270_v10, %v2269_v7 }
0x11ac   :  { %2715 = vrcp.f32 %v710_v14  ;;  %v857_v14 = vrot.slane %v3099_v8, 7 }
0x11b6   :  { %v2716_v15 = vpop.eup %2715 }
0x11b7   :  { %v717_v21 = vmul.f32 %v2716_v15, %v715_v19 }
0x121a   :  { %v720_v16 = vpop.permute.xlu0 %719 }
0x121b   :  { %v722_v17 = vmul.f32 %v2716_v15, %v720_v16  ;;  %v873_v16 = vrot.slane %v3067_v18, 3 }
0x121d   :  { %724 = vrot.lane.b32.xlu1 %v722_v17, %s2868_s25 }
0x128f   :  { %v725_v22 = vpop.permute.xlu1 %724 }
0x1290   :  { %v727_v23 = vadd.f32 %v725_v22, %v717_v21 }
0x1292   :  { %2717 = vtanh.f32 %v727_v23 }
0x129c   :  { %v2718_v38 = vpop.eup %2717 }
0x129d   :  { %730 = vrot.lane.b32.xlu0 %v2718_v38, %s2867_s24 }
0x130f   :  { %v731_v24 = vpop.permute.xlu0 %730 }
0x1310   :  { %v3143_v25 = vmul.f32 %v2716_v15, %v731_v24  ;;  %v2601_v15 = vpack.i.bf16 %v857_v14, %v3115_v34 }
0x1312   :  { %v734_v26 = vpack.c.bf16 %v3143_v25, %v3143_v25  ;;  %v829_v51 = vrot.slane %v3143_v25, 5 }
0x1314   :  { %v736_v27 = vrot.slane %v734_v26, 3  ;;  %v2581_v53 = vpack.i.bf16 %v829_v51, %v3067_v18 }
0x1316   :  { %737 = vrot.lane.b32.xlu1 %v736_v27, %s2868_s25 }
0x1388   :  { %v738_v28 = vpop.permute.xlu1 %737 }
0x1389   :  { %2456 = vmatmul.mubr.msk.bf16.vlgmr.msra.gmra.mrb[24].mxu1 %vm79_vm1, %v738_v28 }
0x138a   :  { %2471 = vmatprep.mubr.msk.bf16.mxu1 %vm2865_vm0, %v2864_v0  ;;  %2468 = vmatpush3.bf16.msra.mxu1 %v964_v2 }
0x138b   :  { %2469 = vmatprep.subr.bf16.mxu1 %v2864_v0 }
0x138e   :  { %2470 = vmatpush3.bf16.msra.mxu1 %v965_v12 }
0x138f   :  { %2483 = vmatprep.subr.bf16.mxu1 %v2864_v0 }
0x145c   :  { %v776_v29 = vpop.f32.mrb[24].mxu1 }
0x145d   :  { %v783_v30 = vrot.slane %v776_v29, 1  ;;  %v2457_v31 = vpop.f32.mrb[25].mxu1 }
0x145e   :  { %v779_v32 = vpop.f32.mrb[26].mxu1 }
0x145f   :  { %v785_v36 = vadd.f32 %v783_v30, %v3045_v39  ;;  %v2458_v33 = vpop.f32.mrb[27].mxu1  ;;  %v794_v39 = vrot.slane %v727_v23, 7 }
0x1461   :  { %2719 = vtanh.f32 %v785_v36  ;;  %v2259_v40 = vmul.f32 -1.442695, %v785_v36 }
0x1463   :  { %2721 = vpow2.f32 %v2259_v40 }
0x146b   :  { %v2720_v35 = vpop.eup %2719 }
0x146c   :  { %798 = vrot.lane.b32.xlu0 %v2720_v35, %s2867_s24 }
0x146d   :  { %v2722_v41 = vpop.eup %2721 }
0x146e   :  { %v789_v42 = vadd.f32 1.0, %v2722_v41 }
0x1470   :  { %2723 = vrcp.f32 %v789_v42 }
0x147a   :  { %v2724_v43 = vpop.eup %2723 }
0x147b   :  { %v796_v49 = vmul.f32 %v2724_v43, %v794_v39 }
0x14de   :  { %v799_v44 = vpop.permute.xlu0 %798 }
0x14df   :  { %v801_v47 = vmul.f32 %v2724_v43, %v799_v44 }
0x14e1   :  { %803 = vrot.lane.b32.xlu1 %v801_v47, %s2868_s25 }
0x14e5   :  { %2587 = vrot.lane.b32.xlu1 %v2586_v48, %s2868_s25 }
0x1553   :  { %v804_v13 = vpop.permute.xlu1 %803 }
0x1554   :  { %v806_v50 = vadd.f32 %v804_v13, %v796_v49 }
0x1556   :  { %2725 = vtanh.f32 %v806_v50 }
0x1557   :  { %v2588_v8 = vpop.permute.xlu1 %2587 }
0x1558   :  { %v2590_v23 = vunpack.i.h.bf16 %v2588_v8  ;;  %v2589_v38 = vunpack.i.l.bf16 %v2588_v8 }
0x155a   :  { %v843_v30 = vsel %vm822_vm2, %v2589_v38, %v2590_v23 }
0x1560   :  { %v2726_v52 = vpop.eup %2725 }
0x1561   :  { %809 = vrot.lane.b32.xlu0 %v2726_v52, %s2867_s24  ;;  %v2272_v52 = vld [vmem:[%s3694_s7 + $0x20] sm:$0xff] }
0x1562   :  { %v3226_v37 = vpack.c.bf16 %v2273_v20, %v2272_v52 }
0x1565   :  { %2582 = vrot.lane.b32.xlu0 %v2581_v53, %s2868_s25 }
0x1569   :  { %2592 = vrot.lane.b32.xlu0 %v2591_v54, %s2868_s25 }
0x156d   :  { %2607 = vrot.lane.b32.xlu0 %v2606_v56, %s2868_s25 }
0x15d3   :  { %v810_v61 = vpop.permute.xlu0 %809 }
0x15d4   :  { %v812_v63 = vmul.f32 %v2724_v43, %v810_v61  ;;  %v2274_v61 = vld [vmem:[%s3694_s7 + $0x30] sm:$0xff] }
0x15d5   :  { %v3237_v46 = vpack.c.bf16 %v2275_v62, %v2274_v61 }
0x15d6   :  { %v2616_v3 = vpack.i.bf16 %v881_v60, %v812_v63  ;;  %v818_v4 = vrot.slane %v812_v63, 7  ;;  %v2265_v60 = vld [vmem:[%s3695_s8 + $0x1] ss:$0 sm:$0xff] }
0x15d7   :  { %v2583_v17 = vpop.permute.xlu0 %2582 }
0x15d8   :  { %2617 = vrot.lane.b32.xlu0 %v2616_v3, %s2868_s25  ;;  %v2596_v11 = vpack.i.bf16 %v818_v4, %v3051_v57  ;;  %v2611_v57 = vpack.i.bf16 %v873_v16, %v3143_v25  ;;  %v2585_v21 = vunpack.i.h.bf16 %v2583_v17  ;;  %v2584_v22 = vunpack.i.l.bf16 %v2583_v17 }
0x15da   :  { %2597 = vrot.lane.b32.xlu1 %v2596_v11, %s2868_s25  ;;  %v833_v18 = vsel %vm822_vm2, %v2584_v22, %v2585_v21 }
0x15db   :  { %v2593_v19 = vpop.permute.xlu0 %2592 }
0x15dc   :  { %v2595_v24 = vunpack.i.h.bf16 %v2593_v19  ;;  %v2594_v26 = vunpack.i.l.bf16 %v2593_v19 }
0x15de   :  { %2602 = vrot.lane.b32.xlu1 %v2601_v15, %s2868_s25  ;;  %v853_v36 = vsel %vm822_vm2, %v2594_v26, %v2595_v24 }
0x15df   :  { %v2608_v27 = vpop.permute.xlu0 %2607 }
0x15e0   :  { %v2610_v42 = vunpack.i.h.bf16 %v2608_v27  ;;  %v2609_v43 = vunpack.i.l.bf16 %v2608_v27 }
0x15e2   :  { %2612 = vrot.lane.b32.xlu1 %v2611_v57, %s2868_s25  ;;  %v869_v51 = vsel %vm822_vm2, %v2609_v43, %v2610_v42 }
0x164a   :  { %v2618_v33 = vpop.permute.xlu0 %2617 }
0x164b   :  { %v2620_v47 = vunpack.i.h.bf16 %v2618_v33  ;;  %v2619_v48 = vunpack.i.l.bf16 %v2618_v33 }
0x164c   :  { %v2598_v34 = vpop.permute.xlu1 %2597 }
0x164d   :  { %v2600_v28 = vunpack.i.h.bf16 %v2598_v34  ;;  %v2599_v29 = vunpack.i.l.bf16 %v2598_v34  ;;  %v885_v55 = vsel %vm822_vm2, %v2619_v48, %v2620_v47 }
0x164f   :  { %v823_v25 = vsel %vm822_vm2, %v2599_v29, %v2600_v28 }
0x1650   :  { %v887_v31 = vsel %vm886_vm3, %v823_v25, %v833_v18  ;;  %v2603_v32 = vpop.permute.xlu1 %2602 }
0x1651   :  { %v889_v35 = vsel %vm888_vm4, %v887_v31, %v843_v30  ;;  %v2605_v40 = vunpack.i.h.bf16 %v2603_v32  ;;  %v2604_v41 = vunpack.i.l.bf16 %v2603_v32 }
0x1652   :  { %v891_v44 = vsel %vm890_vm5, %v889_v35, %v853_v36 }
0x1653   :  { %v861_v45 = vsel %vm822_vm2, %v2604_v41, %v2605_v40 }
0x1654   :  { %v893_v39 = vsel %vm892_vm6, %v891_v44, %v861_v45  ;;  %v2613_v49 = vpop.permute.xlu1 %2612 }
0x1655   :  { %v2615_v13 = vunpack.i.h.bf16 %v2613_v49  ;;  %v2614_v50 = vunpack.i.l.bf16 %v2613_v49  ;;  %v895_v54 = vsel %vm894_vm7, %v893_v39, %v869_v51 }
0x1657   :  { %v877_v53 = vsel %vm822_vm2, %v2614_v50, %v2615_v13 }
0x1658   :  { %v897_v56 = vsel %vm896_vm8, %v895_v54, %v877_v53 }
0x1659   :  { %v899_v58 = vsel %vm898_vm9, %v897_v56, %v885_v55 }
0x165a   :  { %v900_v59 = vpack.c.bf16 %v899_v58, %v899_v58 }
0x165c   :  { %2464 = vmatmul.mubr.msk.bf16.vlgmr.msra.gmra.mrb[12].mxu0 %vm79_vm1, %v900_v59  ;;  %2472 = vmatmul.mubr.msk.bf16.vlgmr.msra.gmra.mrb[28].mxu1 %vm79_vm1, %v900_v59 }
0x165d   :  { %2476 = vmatpush3.bf16.msra.mxu0 %v3226_v37  ;;  %2479 = vmatprep.mubr.msk.bf16.mxu0 %vm2865_vm0, %v2864_v0 }
0x165e   :  { %2477 = vmatprep.subr.bf16.mxu0 %v2864_v0  ;;  %2484 = vmatpush3.bf16.msra.mxu1 %v3226_v37 }
0x165f   :  { %2485 = vmatprep.subr.bf16.mxu1 %v2864_v0  ;;  %2487 = vmatprep.mubr.msk.bf16.mxu1 %vm2865_vm0, %v2864_v0 }
0x1661   :  { %2478 = vmatpush3.bf16.msra.mxu0 %v3237_v46 }
0x1662   :  { %2486 = vmatpush3.bf16.msra.mxu1 %v3237_v46  ;;  %2491 = vmatprep.subr.bf16.mxu0 %v2864_v0 }
0x1663   :  { %2499 = vmatprep.subr.bf16.mxu1 %v2864_v0 }
0x1664   :  { %2480 = vmatmul.mubr.bf16.vlgmr.msra.gmra.mrb[16].mxu0 %v2866_v1 }
0x1665   :  { %2492 = vmatpush3.bf16.msra.mxu0 %v3226_v37  ;;  %2495 = vmatprep.mubr.msk.bf16.mxu0 %vm2865_vm0, %v2864_v0 }
0x1666   :  { %2493 = vmatprep.subr.bf16.mxu0 %v2864_v0 }
0x1669   :  { %2494 = vmatpush3.bf16.msra.mxu0 %v3237_v46 }
0x166a   :  { %2507 = vmatprep.subr.bf16.mxu0 %v2864_v0 }
0x172f   :  { %v953_v63 = vpop.f32.mrb[12].mxu0  ;;  %v1000_v2 = vpop.f32.mrb[28].mxu1 }
0x1730   :  { %v954_v3 = vadd.f32 %v2265_v60, %v953_v63  ;;  %v1082_v4 = vrot.slane %v1000_v2, 5  ;;  %v1163_v5 = vrot.slane %v1000_v2, 3  ;;  %v1246_v6 = vrot.slane %v1000_v2, 1  ;;  %v2465_v7 = vpop.f32.mrb[13].mxu0  ;;  %v2473_v9 = vpop.f32.mrb[29].mxu1 }
0x1731   :  { %v956_v10 = vpop.f32.mrb[14].mxu0  ;;  %v1003_v11 = vpop.f32.mrb[30].mxu1  ;;  %v1014_v12 = vrot.slane %v1000_v2, 7 }
0x1732   :  { %v2466_v14 = vpop.f32.mrb[15].mxu0  ;;  %v2474_v15 = vpop.f32.mrb[31].mxu1  ;;  %v3260_v16 = vadd.f32 %v1082_v4, %v954_v3  ;;  %v3262_v57 = vadd.f32 %v1163_v5, %v954_v3  ;;  %v3264_v17 = vadd.f32 %v1246_v6, %v954_v3 }
0x1733   :  { %v3266_v19 = vadd.f32 %v1014_v12, %v954_v3 }
0x1737   :  { %v1051_v8 = vpop.f32.mrb[16].mxu0 }
0x1738   :  { %v1057_v21 = vadd.f32 %v1051_v8, %v3266_v19  ;;  %v2481_v22 = vpop.f32.mrb[17].mxu0 }
0x1739   :  { %v1054_v23 = vpop.f32.mrb[18].mxu0 }
0x173a   :  { %2727 = vtanh.f32 %v1057_v21  ;;  %v2482_v38 = vpop.f32.mrb[19].mxu0  ;;  %v2276_v24 = vmul.f32 -1.442695, %v1057_v21 }
0x173c   :  { %2729 = vpow2.f32 %v2276_v24 }
0x1744   :  { %v2728_v34 = vpop.eup %2727 }
0x1745   :  { %1067 = vrot.lane.b32.xlu1 %v2728_v34, %s2867_s24 }
0x1746   :  { %v2730_v26 = vpop.eup %2729 }
0x1747   :  { %v1061_v27 = vadd.f32 1.0, %v2730_v26 }
0x1749   :  { %2731 = vrcp.f32 %v1061_v27 }
0x1753   :  { %v2732_v28 = vpop.eup %2731 }
0x1754   :  { %v1065_v25 = vmul.f32 0.0, %v2732_v28 }
0x17b7   :  { %v1068_v29 = vpop.permute.xlu1 %1067 }
0x17b8   :  { %v1070_v18 = vmul.f32 %v2732_v28, %v1068_v29 }
0x17ba   :  { %1072 = vrot.lane.b32.xlu0 %v1070_v18, %s2868_s25 }
0x182c   :  { %v1073_v30 = vpop.permute.xlu0 %1072 }
0x182d   :  { %v1075_v31 = vadd.f32 %v1073_v30, %v1065_v25 }
0x182f   :  { %2733 = vtanh.f32 %v1075_v31  ;;  %v1144_v20 = vrot.slane %v1075_v31, 7 }
0x1839   :  { %v2734_v32 = vpop.eup %2733 }
0x183a   :  { %1078 = vrot.lane.b32.xlu1 %v2734_v32, %s2867_s24 }
0x18ac   :  { %v1079_v36 = vpop.permute.xlu1 %1078 }
0x18ad   :  { %v3272_v33 = vmul.f32 %v2732_v28, %v1079_v36 }
0x18af   :  { %v1085_v35 = vpack.c.bf16 %v3272_v33, %v3272_v33 }
0x18b1   :  { %1087 = vrot.lane.b32.xlu0 %v1085_v35, %s2868_s25 }
0x1923   :  { %v1088_v40 = vpop.permute.xlu0 %1087 }
0x1924   :  { %2488 = vmatmul.mubr.msk.bf16.vlgmr.msra.gmra.mrb[32].mxu1 %vm79_vm1, %v1088_v40 }
0x1925   :  { %2500 = vmatpush3.bf16.msra.mxu1 %v3226_v37  ;;  %2503 = vmatprep.mubr.msk.bf16.mxu1 %vm2865_vm0, %v2864_v0 }
0x1926   :  { %2501 = vmatprep.subr.bf16.mxu1 %v2864_v0 }
0x1929   :  { %2502 = vmatpush3.bf16.msra.mxu1 %v3237_v46 }
0x192a   :  { %2515 = vmatprep.subr.bf16.mxu1 %v2864_v0 }
0x19f7   :  { %v1126_v41 = vpop.f32.mrb[32].mxu1 }
0x19f8   :  { %v1133_v42 = vrot.slane %v1126_v41, 7  ;;  %v2489_v43 = vpop.f32.mrb[33].mxu1 }
0x19f9   :  { %v1129_v44 = vpop.f32.mrb[34].mxu1 }
0x19fa   :  { %v1135_v45 = vadd.f32 %v1133_v42, %v3260_v16  ;;  %v2490_v47 = vpop.f32.mrb[35].mxu1 }
0x19fc   :  { %2735 = vtanh.f32 %v1135_v45  ;;  %v2278_v39 = vmul.f32 -1.442695, %v1135_v45 }
0x19fe   :  { %2737 = vpow2.f32 %v2278_v39 }
0x1a06   :  { %v2736_v48 = vpop.eup %2735 }
0x1a07   :  { %1148 = vrot.lane.b32.xlu1 %v2736_v48, %s2867_s24 }
0x1a08   :  { %v2738_v49 = vpop.eup %2737 }
0x1a09   :  { %v1139_v13 = vadd.f32 1.0, %v2738_v49 }
0x1a0b   :  { %2739 = vrcp.f32 %v1139_v13 }
0x1a15   :  { %v2740_v50 = vpop.eup %2739 }
0x1a16   :  { %v1146_v53 = vmul.f32 %v2740_v50, %v1144_v20 }
0x1a79   :  { %v1149_v51 = vpop.permute.xlu1 %1148 }
0x1a7a   :  { %v1151_v52 = vmul.f32 %v2740_v50, %v1149_v51 }
0x1a7c   :  { %1153 = vrot.lane.b32.xlu0 %v1151_v52, %s2868_s25 }
0x1aee   :  { %v1154_v54 = vpop.permute.xlu0 %1153 }
0x1aef   :  { %v1156_v55 = vadd.f32 %v1154_v54, %v1146_v53 }
0x1af1   :  { %2741 = vtanh.f32 %v1156_v55  ;;  %v1227_v8 = vrot.slane %v1156_v55, 7 }
0x1afb   :  { %v2742_v56 = vpop.eup %2741 }
0x1afc   :  { %1159 = vrot.lane.b32.xlu1 %v2742_v56, %s2867_s24 }
0x1b6e   :  { %v1160_v58 = vpop.permute.xlu1 %1159 }
0x1b6f   :  { %v3288_v59 = vmul.f32 %v2740_v50, %v1160_v58 }
0x1b71   :  { %v1166_v61 = vpack.c.bf16 %v3288_v59, %v3288_v59 }
0x1b73   :  { %v1168_v62 = vshrl.u32 %v1166_v61, 16 }
0x1b75   :  { %1170 = vrot.lane.b32.xlu0 %v1168_v62, %s2868_s25 }
0x1be7   :  { %v1171_v60 = vpop.permute.xlu0 %1170 }
0x1be8   :  { %2496 = vmatmul.mubr.msk.bf16.vlgmr.msra.gmra.mrb[20].mxu0 %vm79_vm1, %v1171_v60 }
0x1be9   :  { %2508 = vmatpush3.bf16.msra.mxu0 %v3226_v37  ;;  %2511 = vmatprep.mubr.msk.bf16.mxu0 %vm2865_vm0, %v2864_v0 }
0x1bea   :  { %2509 = vmatprep.subr.bf16.mxu0 %v2864_v0 }
0x1bed   :  { %2510 = vmatpush3.bf16.msra.mxu0 %v3237_v46 }
0x1bee   :  { %2523 = vmatprep.subr.bf16.mxu0 %v2864_v0 }
0x1cbb   :  { %v1209_v63 = vpop.f32.mrb[20].mxu0 }
0x1cbc   :  { %v1216_v2 = vrot.slane %v1209_v63, 6  ;;  %v2497_v3 = vpop.f32.mrb[21].mxu0 }
0x1cbd   :  { %v1212_v4 = vpop.f32.mrb[22].mxu0 }
0x1cbe   :  { %v1218_v5 = vadd.f32 %v1216_v2, %v3262_v57  ;;  %v2498_v6 = vpop.f32.mrb[23].mxu0 }
0x1cc0   :  { %2743 = vtanh.f32 %v1218_v5  ;;  %v2280_v9 = vmul.f32 -1.442695, %v1218_v5 }
0x1cc2   :  { %2745 = vpow2.f32 %v2280_v9 }
0x1cca   :  { %v2744_v7 = vpop.eup %2743 }
0x1ccb   :  { %1231 = vrot.lane.b32.xlu1 %v2744_v7, %s2867_s24 }
0x1ccc   :  { %v2746_v10 = vpop.eup %2745 }
0x1ccd   :  { %v1222_v11 = vadd.f32 1.0, %v2746_v10 }
0x1ccf   :  { %2747 = vrcp.f32 %v1222_v11 }
0x1cd9   :  { %v2748_v12 = vpop.eup %2747 }
0x1cda   :  { %v1229_v21 = vmul.f32 %v2748_v12, %v1227_v8 }
0x1d3d   :  { %v1232_v14 = vpop.permute.xlu1 %1231 }
0x1d3e   :  { %v1234_v15 = vmul.f32 %v2748_v12, %v1232_v14 }
0x1d40   :  { %1236 = vrot.lane.b32.xlu0 %v1234_v15, %s2868_s25 }
0x1db2   :  { %v1237_v22 = vpop.permute.xlu0 %1236 }
0x1db3   :  { %v1239_v23 = vadd.f32 %v1237_v22, %v1229_v21 }
0x1db5   :  { %2749 = vtanh.f32 %v1239_v23  ;;  %v1309_v45 = vrot.slane %v1239_v23, 7 }
0x1dbf   :  { %v2750_v38 = vpop.eup %2749 }
0x1dc0   :  { %1242 = vrot.lane.b32.xlu1 %v2750_v38, %s2867_s24 }
0x1e32   :  { %v1243_v34 = vpop.permute.xlu1 %1242 }
0x1e33   :  { %v3304_v24 = vmul.f32 %v2748_v12, %v1243_v34 }
0x1e35   :  { %v1249_v26 = vpack.c.bf16 %v3304_v24, %v3304_v24 }
0x1e37   :  { %v1251_v27 = vrot.slane %v1249_v26, 1 }
0x1e39   :  { %1252 = vrot.lane.b32.xlu0 %v1251_v27, %s2868_s25 }
0x1eab   :  { %v1253_v28 = vpop.permute.xlu0 %1252 }
0x1eac   :  { %2504 = vmatmul.mubr.msk.bf16.vlgmr.msra.gmra.mrb[36].mxu1 %vm79_vm1, %v1253_v28 }
0x1ead   :  { %2516 = vmatpush3.bf16.msra.mxu1 %v3226_v37  ;;  %2519 = vmatprep.mubr.msk.bf16.mxu1 %vm2865_vm0, %v2864_v0 }
0x1eae   :  { %2517 = vmatprep.subr.bf16.mxu1 %v2864_v0 }
0x1eb1   :  { %2518 = vmatpush3.bf16.msra.mxu1 %v3237_v46 }
0x1eb2   :  { %2531 = vmatprep.subr.bf16.mxu1 %v2864_v0 }
0x1f7f   :  { %v1291_v29 = vpop.f32.mrb[36].mxu1 }
0x1f80   :  { %v1298_v18 = vrot.slane %v1291_v29, 5  ;;  %v2505_v25 = vpop.f32.mrb[37].mxu1 }
0x1f81   :  { %v1294_v30 = vpop.f32.mrb[38].mxu1 }
0x1f82   :  { %v1300_v31 = vadd.f32 %v1298_v18, %v3264_v17  ;;  %v2506_v32 = vpop.f32.mrb[39].mxu1 }
0x1f84   :  { %2751 = vtanh.f32 %v1300_v31  ;;  %v2282_v35 = vmul.f32 -1.442695, %v1300_v31 }
0x1f86   :  { %2753 = vpow2.f32 %v2282_v35 }
0x1f8e   :  { %v2752_v36 = vpop.eup %2751 }
0x1f8f   :  { %1313 = vrot.lane.b32.xlu1 %v2752_v36, %s2867_s24 }
0x1f90   :  { %v2754_v40 = vpop.eup %2753 }
0x1f91   :  { %v1304_v41 = vadd.f32 1.0, %v2754_v40 }
0x1f93   :  { %2755 = vrcp.f32 %v1304_v41 }
0x1f9d   :  { %v2756_v42 = vpop.eup %2755 }
0x1f9e   :  { %v1311_v47 = vmul.f32 %v2756_v42, %v1309_v45 }
0x2001   :  { %v1314_v43 = vpop.permute.xlu1 %1313 }
0x2002   :  { %v1316_v44 = vmul.f32 %v2756_v42, %v1314_v43 }
0x2004   :  { %1318 = vrot.lane.b32.xlu0 %v1316_v44, %s2868_s25 }
0x2076   :  { %v1319_v48 = vpop.permute.xlu0 %1318 }
0x2077   :  { %v1321_v39 = vadd.f32 %v1319_v48, %v1311_v47 }
0x2079   :  { %2757 = vtanh.f32 %v1321_v39  ;;  %v1390_v7 = vrot.slane %v1321_v39, 7 }
0x2083   :  { %v2758_v49 = vpop.eup %2757 }
0x2084   :  { %1324 = vrot.lane.b32.xlu1 %v2758_v49, %s2867_s24 }
0x20f6   :  { %v1325_v13 = vpop.permute.xlu1 %1324 }
0x20f7   :  { %v3320_v50 = vmul.f32 %v2756_v42, %v1325_v13 }
0x20f9   :  { %v1328_v51 = vpack.c.bf16 %v3320_v50, %v3320_v50 }
0x20fb   :  { %v1330_v52 = vshrl.u32 %v1328_v51, 16 }
0x20fd   :  { %v1332_v20 = vrot.slane %v1330_v52, 1 }
0x20ff   :  { %1333 = vrot.lane.b32.xlu0 %v1332_v20, %s2868_s25 }
0x2171   :  { %v1334_v53 = vpop.permute.xlu0 %1333 }
0x2172   :  { %2512 = vmatmul.mubr.msk.bf16.vlgmr.msra.gmra.mrb[24].mxu0 %vm79_vm1, %v1334_v53 }
0x2173   :  { %2524 = vmatpush3.bf16.msra.mxu0 %v3226_v37  ;;  %2527 = vmatprep.mubr.msk.bf16.mxu0 %vm2865_vm0, %v2864_v0 }
0x2174   :  { %2525 = vmatprep.subr.bf16.mxu0 %v2864_v0 }
0x2177   :  { %2526 = vmatpush3.bf16.msra.mxu0 %v3237_v46 }
0x2178   :  { %2539 = vmatprep.subr.bf16.mxu0 %v2864_v0 }
0x2245   :  { %v1372_v54 = vpop.f32.mrb[24].mxu0 }
0x2246   :  { %v1379_v55 = vrot.slane %v1372_v54, 4  ;;  %v2513_v56 = vpop.f32.mrb[25].mxu0 }
0x2247   :  { %v1375_v58 = vpop.f32.mrb[26].mxu0 }
0x2248   :  { %v1381_v61 = vadd.f32 %v1379_v55, %v3266_v19  ;;  %v2514_v62 = vpop.f32.mrb[27].mxu0 }
0x224a   :  { %2759 = vtanh.f32 %v1381_v61  ;;  %v2284_v63 = vmul.f32 -1.442695, %v1381_v61 }
0x224c   :  { %2761 = vpow2.f32 %v2284_v63 }
0x2254   :  { %v2760_v60 = vpop.eup %2759 }
0x2255   :  { %1394 = vrot.lane.b32.xlu1 %v2760_v60, %s2867_s24 }
0x2256   :  { %v2762_v2 = vpop.eup %2761 }
0x2257   :  { %v1385_v3 = vadd.f32 1.0, %v2762_v2 }
0x2259   :  { %2763 = vrcp.f32 %v1385_v3 }
0x2263   :  { %v2764_v4 = vpop.eup %2763 }
0x2264   :  { %v1392_v9 = vmul.f32 %v2764_v4, %v1390_v7 }
0x22c7   :  { %v1395_v5 = vpop.permute.xlu1 %1394 }
0x22c8   :  { %v1397_v6 = vmul.f32 %v2764_v4, %v1395_v5 }
0x22ca   :  { %1399 = vrot.lane.b32.xlu0 %v1397_v6, %s2868_s25 }
0x233c   :  { %v1400_v10 = vpop.permute.xlu0 %1399 }
0x233d   :  { %v1402_v11 = vadd.f32 %v1400_v10, %v1392_v9 }
0x233f   :  { %2765 = vtanh.f32 %v1402_v11  ;;  %v1469_v31 = vrot.slane %v1402_v11, 7 }
0x2349   :  { %v2766_v19 = vpop.eup %2765 }
0x234a   :  { %1405 = vrot.lane.b32.xlu1 %v2766_v19, %s2867_s24 }
0x23bc   :  { %v1406_v12 = vpop.permute.xlu1 %1405 }
0x23bd   :  { %v3336_v14 = vmul.f32 %v2764_v4, %v1406_v12 }
0x23bf   :  { %v1409_v15 = vpack.c.bf16 %v3336_v14, %v3336_v14 }
0x23c1   :  { %v1411_v8 = vrot.slane %v1409_v15, 2 }
0x23c3   :  { %1412 = vrot.lane.b32.xlu0 %v1411_v8, %s2868_s25 }
0x2435   :  { %v1413_v21 = vpop.permute.xlu0 %1412 }
0x2436   :  { %2520 = vmatmul.mubr.msk.bf16.vlgmr.msra.gmra.mrb[40].mxu1 %vm79_vm1, %v1413_v21 }
0x2437   :  { %2532 = vmatpush3.bf16.msra.mxu1 %v3226_v37  ;;  %2535 = vmatprep.mubr.msk.bf16.mxu1 %vm2865_vm0, %v2864_v0 }
0x2438   :  { %2533 = vmatprep.subr.bf16.mxu1 %v2864_v0 }
0x243b   :  { %2534 = vmatpush3.bf16.msra.mxu1 %v3237_v46 }
0x243c   :  { %2547 = vmatprep.subr.bf16.mxu1 %v2864_v0 }
0x2509   :  { %v1451_v22 = vpop.f32.mrb[40].mxu1 }
0x250a   :  { %v1458_v23 = vrot.slane %v1451_v22, 3  ;;  %v2521_v38 = vpop.f32.mrb[41].mxu1 }
0x250b   :  { %v1454_v34 = vpop.f32.mrb[42].mxu1 }
0x250c   :  { %v1460_v26 = vadd.f32 %v1458_v23, %v3260_v16  ;;  %v2522_v27 = vpop.f32.mrb[43].mxu1 }
0x250e   :  { %2767 = vtanh.f32 %v1460_v26  ;;  %v2286_v37 = vmul.f32 -1.442695, %v1460_v26 }
0x2510   :  { %2769 = vpow2.f32 %v2286_v37 }
0x2518   :  { %v2768_v28 = vpop.eup %2767 }
0x2519   :  { %1473 = vrot.lane.b32.xlu1 %v2768_v28, %s2867_s24 }
0x251a   :  { %v2770_v29 = vpop.eup %2769 }
0x251b   :  { %v1464_v18 = vadd.f32 1.0, %v2770_v29 }
0x251d   :  { %2771 = vrcp.f32 %v1464_v18 }
0x2527   :  { %v2772_v25 = vpop.eup %2771 }
0x2528   :  { %v1471_v32 = vmul.f32 %v2772_v25, %v1469_v31 }
0x258b   :  { %v1474_v46 = vpop.permute.xlu1 %1473 }
0x258c   :  { %v1476_v30 = vmul.f32 %v2772_v25, %v1474_v46  ;;  %v1683_v46 = vrot.slane %v3336_v14, 1 }
0x258e   :  { %1478 = vrot.lane.b32.xlu0 %v1476_v30, %s2868_s25  ;;  %v2631_v31 = vpack.i.bf16 %v1683_v46, %v3320_v50  ;;  %v1787_v46 = vld [vmem:[%s3698_s11 + $0x8] sm:$0xff] }
0x2600   :  { %v1479_v36 = vpop.permute.xlu0 %1478 }
0x2601   :  { %v1481_v35 = vadd.f32 %v1479_v36, %v1471_v32  ;;  %v1699_v32 = vrot.slane %v3304_v24, 5 }
0x2603   :  { %2773 = vtanh.f32 %v1481_v35  ;;  %v1550_v61 = vrot.slane %v1481_v35, 7 }
0x260d   :  { %v2774_v16 = vpop.eup %2773 }
0x260e   :  { %1484 = vrot.lane.b32.xlu1 %v2774_v16, %s2867_s24  ;;  %v1728_v16 = vld [vmem:[%s3696_s9] sm:$0xff] }
0x2680   :  { %v1485_v40 = vpop.permute.xlu1 %1484 }
0x2681   :  { %v3352_v41 = vmul.f32 %v2772_v25, %v1485_v40  ;;  %v1729_v40 = vld [vmem:[%s3696_s9 + $0x8] sm:$0xff] }
0x2683   :  { %v1488_v42 = vpack.c.bf16 %v3352_v41, %v3352_v41  ;;  %v1673_v34 = vrot.slane %v3352_v41, 3  ;;  %v2646_v36 = vpack.i.bf16 %v1699_v32, %v3352_v41  ;;  %v1730_v41 = vld [vmem:[%s3696_s9 + $0x10] sm:$0xff]  ;;  %v1789_v32 = vld [vmem:[%s3698_s11 + $0x18] sm:$0xff] }
0x2685   :  { %v1490_v43 = vshrl.u32 %v1488_v42, 16  ;;  %v2626_v27 = vpack.i.bf16 %v1673_v34, %v3304_v24  ;;  %v1715_v42 = vrot.slane %v3272_v33, 1 }
0x2687   :  { %v1492_v44 = vrot.slane %v1490_v43, 2 }
0x2689   :  { %1493 = vrot.lane.b32.xlu0 %v1492_v44, %s2868_s25  ;;  %v1732_v44 = vpack.c.bf16 %v1729_v40, %v1728_v16  ;;  %v1867_v16 = vld [vmem:[%s3687_s0] sm:$0xff]  ;;  %v1869_v40 = vld [vmem:[%s3687_s0 + $0x10] sm:$0xff] }
0x26fb   :  { %v1494_v45 = vpop.permute.xlu0 %1493 }
0x26fc   :  { %2528 = vmatmul.mubr.msk.bf16.vlgmr.msra.gmra.mrb[28].mxu0 %vm79_vm1, %v1494_v45 }
0x26fd   :  { %2543 = vmatprep.mubr.msk.bf16.mxu0 %vm2865_vm0, %v2864_v0  ;;  %2540 = vmatpush3.bf16.msra.mxu0 %v1732_v44  ;;  %v1843_v44 = vld [vmem:[%s3690_s3 + $0x8] sm:$0xff] }
0x26fe   :  { %2541 = vmatprep.subr.bf16.mxu0 %v2864_v0 }
0x27cf   :  { %v1532_v47 = vpop.f32.mrb[28].mxu0 }
0x27d0   :  { %v1539_v48 = vrot.slane %v1532_v47, 2  ;;  %v2529_v39 = vpop.f32.mrb[29].mxu0  ;;  %v1731_v47 = vld [vmem:[%s3696_s9 + $0x18] sm:$0xff] }
0x27d1   :  { %v1535_v49 = vpop.f32.mrb[30].mxu0  ;;  %v1733_v39 = vpack.c.bf16 %v1731_v47, %v1730_v41  ;;  %v1845_v41 = vld [vmem:[%s3690_s3 + $0x18] sm:$0xff]  ;;  %v1871_v47 = vld [vmem:[%s3687_s0 + $0x20] sm:$0xff] }
0x27d2   :  { %v1541_v13 = vadd.f32 %v1539_v48, %v3262_v57  ;;  %v2530_v51 = vpop.f32.mrb[31].mxu0  ;;  %v1691_v49 = vrot.slane %v3320_v50, 7 }
0x27d3   :  { %2542 = vmatpush3.bf16.msra.mxu0 %v1733_v39  ;;  %v1707_v51 = vrot.slane %v3288_v59, 3 }
0x27d4   :  { %2775 = vtanh.f32 %v1541_v13  ;;  %v2288_v20 = vmul.f32 -1.442695, %v1541_v13  ;;  %1937 = vmatprep.subr.bf16.mxu0 %v2866_v1  ;;  %v2641_v13 = vpack.i.bf16 %v1691_v49, %v3336_v14  ;;  %v1846_v49 = vld [vmem:[%s3690_s3 + $0x20] sm:$0xff] }
0x27d6   :  { %2777 = vpow2.f32 %v2288_v20 }
0x27de   :  { %v2776_v52 = vpop.eup %2775 }
0x27df   :  { %1554 = vrot.lane.b32.xlu1 %v2776_v52, %s2867_s24 }
0x27e0   :  { %v2778_v53 = vpop.eup %2777 }
0x27e1   :  { %v1545_v54 = vadd.f32 1.0, %v2778_v53 }
0x27e3   :  { %2779 = vrcp.f32 %v1545_v54 }
0x27ed   :  { %v2780_v55 = vpop.eup %2779 }
0x27ee   :  { %v1552_v62 = vmul.f32 %v2780_v55, %v1550_v61 }
0x2851   :  { %v1555_v56 = vpop.permute.xlu1 %1554 }
0x2852   :  { %v1557_v58 = vmul.f32 %v2780_v55, %v1555_v56 }
0x2854   :  { %1559 = vrot.lane.b32.xlu0 %v1557_v58, %s2868_s25 }
0x28c6   :  { %v1560_v60 = vpop.permute.xlu0 %1559 }
0x28c7   :  { %v1562_v63 = vadd.f32 %v1560_v60, %v1552_v62 }
0x28c9   :  { %2781 = vtanh.f32 %v1562_v63 }
0x28d3   :  { %v2782_v57 = vpop.eup %2781 }
0x28d4   :  { %1565 = vrot.lane.b32.xlu1 %v2782_v57, %s2867_s24 }
0x2946   :  { %v1566_v2 = vpop.permute.xlu1 %1565 }
0x2947   :  { %v3364_v3 = vmul.f32 %v2780_v55, %v1566_v2 }
0x2949   :  { %v1569_v4 = vpack.c.bf16 %v3364_v3, %v3364_v3  ;;  %v1663_v18 = vrot.slane %v3364_v3, 5  ;;  %v2651_v52 = vpack.i.bf16 %v1707_v51, %v3364_v3  ;;  %v2077_v51 = vld [vmem:[%s3688_s1 + $0x8] sm:$0xff] }
0x294b   :  { %v1571_v5 = vrot.slane %v1569_v4, 3  ;;  %v2621_v30 = vpack.i.bf16 %v1663_v18, %v3288_v59 }
0x294d   :  { %1572 = vrot.lane.b32.xlu0 %v1571_v5, %s2868_s25 }
0x29bf   :  { %v1573_v6 = vpop.permute.xlu0 %1572 }
0x29c0   :  { %2536 = vmatmul.mubr.msk.bf16.vlgmr.msra.gmra.mrb[44].mxu1 %vm79_vm1, %v1573_v6 }
0x29c1   :  { %2551 = vmatprep.mubr.msk.bf16.mxu1 %vm2865_vm0, %v2864_v0 }
0x2a93   :  { %v1611_v7 = vpop.f32.mrb[44].mxu1 }
0x2a94   :  { %v1618_v9 = vrot.slane %v1611_v7, 1  ;;  %v2537_v10 = vpop.f32.mrb[45].mxu1 }
0x2a95   :  { %v1614_v11 = vpop.f32.mrb[46].mxu1 }
0x2a96   :  { %v1620_v19 = vadd.f32 %v1618_v9, %v3264_v17  ;;  %v2538_v12 = vpop.f32.mrb[47].mxu1  ;;  %v1629_v17 = vrot.slane %v1562_v63, 7 }
0x2a98   :  { %2783 = vtanh.f32 %v1620_v19  ;;  %v2290_v8 = vmul.f32 -1.442695, %v1620_v19 }
0x2a9a   :  { %2785 = vpow2.f32 %v2290_v8 }
0x2aa2   :  { %v2784_v15 = vpop.eup %2783 }
0x2aa3   :  { %1633 = vrot.lane.b32.xlu1 %v2784_v15, %s2867_s24 }
0x2aa4   :  { %v2786_v21 = vpop.eup %2785 }
0x2aa5   :  { %v1624_v22 = vadd.f32 1.0, %v2786_v21 }
0x2aa7   :  { %2787 = vrcp.f32 %v1624_v22 }
0x2ab1   :  { %v2788_v23 = vpop.eup %2787 }
0x2ab2   :  { %v1631_v28 = vmul.f32 %v2788_v23, %v1629_v17 }
0x2b15   :  { %v1634_v38 = vpop.permute.xlu1 %1633 }
0x2b16   :  { %v1636_v26 = vmul.f32 %v2788_v23, %v1634_v38 }
0x2b18   :  { %1638 = vrot.lane.b32.xlu0 %v1636_v26, %s2868_s25 }
0x2b1c   :  { %2627 = vrot.lane.b32.xlu0 %v2626_v27, %s2868_s25 }
0x2b8a   :  { %v1639_v37 = vpop.permute.xlu0 %1638 }
0x2b8b   :  { %v1641_v29 = vadd.f32 %v1639_v37, %v1631_v28 }
0x2b8d   :  { %2789 = vtanh.f32 %v1641_v29 }
0x2b8e   :  { %v2628_v53 = vpop.permute.xlu0 %2627 }
0x2b8f   :  { %v2630_v55 = vunpack.i.h.bf16 %v2628_v53  ;;  %v2629_v56 = vunpack.i.l.bf16 %v2628_v53  ;;  %v1849_v53 = vld [vmem:[%s3690_s3 + $0x38] sm:$0xff] }
0x2b91   :  { %v1677_v2 = vsel %vm822_vm2, %v2629_v56, %v2630_v55  ;;  %v1850_v55 = vld [vmem:[%s3690_s3 + $0x40] sm:$0xff]  ;;  %v1851_v56 = vld [vmem:[%s3690_s3 + $0x48] sm:$0xff] }
0x2b97   :  { %v2790_v25 = vpop.eup %2789 }
0x2b98   :  { %1644 = vrot.lane.b32.xlu1 %v2790_v25, %s2867_s24  ;;  %v1786_v25 = vld [vmem:[%s3698_s11] sm:$0xff] }
0x2b9c   :  { %2622 = vrot.lane.b32.xlu1 %v2621_v30, %s2868_s25  ;;  %v1790_v30 = vpack.c.bf16 %v1787_v46, %v1786_v25 }
0x2b9e   :  { %2548 = vmatpush3.bf16.msra.mxu1 %v1790_v30 }
0x2b9f   :  { %2549 = vmatprep.subr.bf16.mxu1 %v2864_v0 }
0x2ba0   :  { %2632 = vrot.lane.b32.xlu1 %v2631_v31, %s2868_s25  ;;  %v1788_v31 = vld [vmem:[%s3698_s11 + $0x10] sm:$0xff] }
0x2ba4   :  { %2647 = vrot.lane.b32.xlu1 %v2646_v36, %s2868_s25  ;;  %v1791_v36 = vpack.c.bf16 %v1789_v32, %v1788_v31 }
0x2ba6   :  { %2550 = vmatpush3.bf16.msra.mxu1 %v1791_v36 }
0x2ba7   :  { %2555 = vmatprep.subr.bf16.mxu1 %v2864_v0 }
0x2c0a   :  { %v1645_v35 = vpop.permute.xlu1 %1644 }
0x2c0b   :  { %v1647_v43 = vmul.f32 %v2788_v23, %v1645_v35  ;;  %v1868_v35 = vld [vmem:[%s3687_s0 + $0x8] sm:$0xff] }
0x2c0d   :  { %v2656_v24 = vpack.i.bf16 %v1715_v42, %v1647_v43  ;;  %v1653_v45 = vrot.slane %v1647_v43, 7  ;;  %v1870_v42 = vld [vmem:[%s3687_s0 + $0x18] sm:$0xff]  ;;  %v1842_v43 = vld [vmem:[%s3690_s3] sm:$0xff] }
0x2c0e   :  { %v2623_v20 = vpop.permute.xlu1 %2622 }
0x2c0f   :  { %2657 = vrot.lane.b32.xlu1 %v2656_v24, %s2868_s25  ;;  %v2636_v48 = vpack.i.bf16 %v1653_v45, %v3272_v33  ;;  %v2625_v54 = vunpack.i.h.bf16 %v2623_v20  ;;  %v2624_v50 = vunpack.i.l.bf16 %v2623_v20  ;;  %v1844_v24 = vld [vmem:[%s3690_s3 + $0x10] sm:$0xff]  ;;  %v1858_v45 = vpack.c.bf16 %v1843_v44, %v1842_v43 }
0x2c10   :  { %v1859_v39 = vpack.c.bf16 %v1845_v41, %v1844_v24  ;;  %v2869_v44 = vmov 1.0|1.0  }
0x2c11   :  { %2637 = vrot.lane.b32.xlu0 %v2636_v48, %s2868_s25  ;;  %v1667_v59 = vsel %vm822_vm2, %v2624_v50, %v2625_v54  ;;  %v1872_v48 = vld [vmem:[%s3687_s0 + $0x28] sm:$0xff]  ;;  %v2078_v54 = vld [vmem:[%s3688_s1 + $0x10] sm:$0xff] }
0x2c12   :  { %v2633_v33 = vpop.permute.xlu1 %2632 }
0x2c13   :  { %v2635_v61 = vunpack.i.h.bf16 %v2633_v33  ;;  %v2634_v62 = vunpack.i.l.bf16 %v2633_v33  ;;  %1880 = vperm.xlu1 %2662, %v1868_v35   ;;  %v1848_v33 = vld [vmem:[%s3690_s3 + $0x30] sm:$0xff] }
0x2c14   :  { %v1861_v50 = vpack.c.bf16 %v1849_v53, %v1848_v33 }
0x2c15   :  { %2642 = vrot.lane.b32.xlu0 %v2641_v13, %s2868_s25  ;;  %v1687_v5 = vsel %vm822_vm2, %v2634_v62, %v2635_v61  ;;  %v1847_v13 = vld [vmem:[%s3690_s3 + $0x28] sm:$0xff]  ;;  %v1852_v61 = vld [vmem:[%s3690_s3 + $0x50] sm:$0xff]  ;;  %v1853_v62 = vld [vmem:[%s3690_s3 + $0x58] sm:$0xff] }
0x2c16   :  { %v2648_v60 = vpop.permute.xlu1 %2647  ;;  %v1860_v20 = vpack.c.bf16 %v1847_v13, %v1846_v49 }
0x2c17   :  { %v2650_v11 = vunpack.i.h.bf16 %v2648_v60  ;;  %v2649_v19 = vunpack.i.l.bf16 %v2648_v60  ;;  %1883 = vperm.xlu1 %2662, %v1869_v40   ;;  %v1863_v60 = vpack.c.bf16 %v1853_v62, %v1852_v61 }
0x2c19   :  { %2652 = vrot.lane.b32.xlu0 %v2651_v52, %s2868_s25  ;;  %v1703_v26 = vsel %vm822_vm2, %v2649_v19, %v2650_v11  ;;  %v2076_v52 = vld [vmem:[%s3688_s1] sm:$0xff] }
0x2c1b   :  { %1889 = vperm.xlu1 %2662, %v1871_v47   ;;  %v1999_v47 = vld [vmem:[%s3700_s13 + $0x10] sm:$0xff] }
0x2c1d   :  { %1877 = vperm.xlu0 %2661, %v1867_v16  }
0x2c1f   :  { %2146 = vperm.xlu1 %2662, %v2077_v51  }
0x2c21   :  { %1886 = vperm.xlu0 %2661, %v1870_v42  }
0x2c23   :  { %2149 = vperm.xlu1 %2662, %v2078_v54  }
0x2c25   :  { %1892 = vperm.xlu0 %2661, %v1872_v48   ;;  %v2000_v48 = vld [vmem:[%s3700_s13 + $0x18] sm:$0xff] }
0x2c29   :  { %2143 = vperm.xlu0 %2661, %v2076_v52  }
0x2c81   :  { %v2658_v6 = vpop.permute.xlu1 %2657 }
0x2c82   :  { %v2660_v8 = vunpack.i.h.bf16 %v2658_v6  ;;  %v2659_v21 = vunpack.i.l.bf16 %v2658_v6  ;;  %v1873_v6 = vlaneseq }
0x2c83   :  { %v2638_v58 = vpop.permute.xlu0 %2637 }
0x2c84   :  { %v2640_v14 = vunpack.i.h.bf16 %v2638_v58  ;;  %v2639_v63 = vunpack.i.l.bf16 %v2638_v58  ;;  %v1719_v28 = vsel %vm822_vm2, %v2659_v21, %v2660_v8  ;;  %v1862_v58 = vpack.c.bf16 %v1851_v56, %v1850_v55 }
0x2c85   :  { %v3521_v11 = vand.u32 127, %v1873_v6 }
0x2c86   :  { %v1657_v57 = vsel %vm822_vm2, %v2639_v63, %v2640_v14  ;;  %v1854_v14 = vld [vmem:[%s3690_s3 + $0x60] sm:$0xff]  ;;  %v1855_v63 = vld [vmem:[%s3690_s3 + $0x68] sm:$0xff] }
0x2c87   :  { %v1720_v3 = vsel %vm886_vm3, %v1657_v57, %v1667_v59  ;;  %v2643_v4 = vpop.permute.xlu0 %2642  ;;  %v1864_v59 = vpack.c.bf16 %v1855_v63, %v1854_v14  ;;  %v2291_v57 = vld [vmem:[%s3697_s10] ss:$0 sm:$0xff]  ;;  %v1875_v8 = vadd.s32 128, %v3521_v11 }
0x2c88   :  { %v1721_v7 = vsel %vm888_vm4, %v1720_v3, %v1677_v2  ;;  %v2645_v9 = vunpack.i.h.bf16 %v2643_v4  ;;  %v2644_v10 = vunpack.i.l.bf16 %v2643_v4  ;;  %v2304_v14 = vld [vmem:[%s3701_s14] ss:$0 sm:$0xff] }
0x2c89   :  { %v1722_v12 = vsel %vm890_vm5, %v1721_v7, %v1687_v5 }
0x2c8a   :  { %v1695_v15 = vsel %vm822_vm2, %v2644_v10, %v2645_v9 }
0x2c8b   :  { %v1723_v22 = vsel %vm892_vm6, %v1722_v12, %v1695_v15  ;;  %v2653_v23 = vpop.permute.xlu0 %2652 }
0x2c8c   :  { %v2655_v38 = vunpack.i.h.bf16 %v2653_v23  ;;  %v2654_v34 = vunpack.i.l.bf16 %v2653_v23  ;;  %v1724_v17 = vsel %vm894_vm7, %v1723_v22, %v1703_v26  ;;  %v1856_v23 = vld [vmem:[%s3690_s3 + $0x70] sm:$0xff] }
0x2c8e   :  { %v1711_v27 = vsel %vm822_vm2, %v2654_v34, %v2655_v38  ;;  %v1857_v38 = vld [vmem:[%s3690_s3 + $0x78] sm:$0xff] }
0x2c8f   :  { %v1725_v37 = vsel %vm896_vm8, %v1724_v17, %v1711_v27  ;;  %v1865_v34 = vpack.c.bf16 %v1857_v38, %v1856_v23  ;;  %v1997_v27 = vld [vmem:[%s3700_s13] sm:$0xff]  ;;  %v1998_v17 = vld [vmem:[%s3700_s13 + $0x8] sm:$0xff]  ;;  %v2079_v38 = vld [vmem:[%s3688_s1 + $0x18] sm:$0xff] }
0x2c90   :  { %v1726_v29 = vsel %vm898_vm9, %v1725_v37, %v1719_v28  ;;  %v2001_v28 = vpack.c.bf16 %v1998_v17, %v1997_v27  ;;  %v2293_v37 = vld [vmem:[%s3699_s12] ss:$0 sm:$0xff] }
0x2c91   :  { %v1727_v18 = vpack.c.bf16 %v1726_v29, %v1726_v29  ;;  %v2080_v23 = vld [vmem:[%s3688_s1 + $0x20] sm:$0xff] }
0x2c92   :  { %v1881_v19 = vpop.permute.xlu1 %1880 }
0x2c93   :  { %2544 = vmatmul.mubr.msk.bf16.vlgmr.msra.gmra.mrb[32].mxu0 %vm79_vm1, %v1727_v18  ;;  %vm1896_vm10 = vcmp.eq.s32.totalorder %v3521_v11, %v1881_v19  ;;  %vm1897_vm13 = vcmp.eq.s32.totalorder %v1875_v8, %v1881_v19 }
0x2c94   :  { %1938 = vmatpush1.bf16.msra.mxu0 %v1858_v45  ;;  %v1909_v21 = vsel %vm1897_vm13, 1.0, %v2864_v0 }
0x2c95   :  { %1939 = vmatprep.subr.bf16.mxu0 %v2866_v1 }
0x2c98   :  { %1940 = vmatpush1.bf16.msra.mxu0 %v1859_v39  ;;  %v2002_v39 = vpack.c.bf16 %v2000_v48, %v1999_v47 }
0x2c99   :  { %1941 = vmatprep.subr.bf16.mxu0 %v2866_v1 }
0x2c9c   :  { %1942 = vmatpush1.bf16.msra.mxu0 %v1860_v20  ;;  %v1878_v12 = vpop.permute.xlu0 %1877 }
0x2c9d   :  { %1943 = vmatprep.subr.bf16.mxu0 %v2866_v1  ;;  %vm1894_vm11 = vcmp.eq.s32.totalorder %v3521_v11, %v1878_v12  ;;  %vm1895_vm14 = vcmp.eq.s32.totalorder %v1875_v8, %v1878_v12 }
0x2c9e   :  { %vm3528_vm12 = vmpackc.low %vm1896_vm10, %vm1894_vm11  ;;  %v1907_v22 = vsel %vm1895_vm14, 1.0, %v2864_v0 }
0x2c9f   :  { %v1919_v26 = vpack.c.bf16 %v1909_v21, %v1907_v22 }
0x2ca0   :  { %1944 = vmatpush1.bf16.msra.mxu0 %v1861_v50  ;;  %v1887_v18 = vpop.permute.xlu0 %1886 }
0x2ca1   :  { %1945 = vmatprep.subr.bf16.mxu0 %v2866_v1  ;;  %2295 = vmatprep.mubr.msk.bf16.mxu0 %vm1924_vm15, %v1919_v26  ;;  %vm1901_vm3 = vcmp.eq.s32.totalorder %v1875_v8, %v1887_v18  ;;  %vm1900_vm8 = vcmp.eq.s32.totalorder %v3521_v11, %v1887_v18 }
0x2ca2   :  { %v1913_v35 = vsel %vm1901_vm3, 1.0, %v2864_v0  ;;  %vm2225_vm3 = vcmask 0  }
0x2ca4   :  { %1946 = vmatpush1.bf16.msra.mxu0 %v1862_v58  ;;  %v1893_v43 = vpop.permute.xlu0 %1892 }
0x2ca5   :  { %1947 = vmatprep.subr.bf16.mxu0 %v2866_v1  ;;  %vm1905_vm5 = vcmp.eq.s32.totalorder %v1875_v8, %v1893_v43  ;;  %vm1904_vm10 = vcmp.eq.s32.totalorder %v3521_v11, %v1893_v43 }
0x2ca6   :  { %v1917_v45 = vsel %vm1905_vm5, 1.0, %v2864_v0 }
0x2ca8   :  { %1948 = vmatpush1.bf16.msra.mxu0 %v1863_v60  ;;  %v2144_v17 = vpop.permute.xlu0 %2143 }
0x2ca9   :  { %1949 = vmatprep.subr.bf16.mxu0 %v2866_v1 }
0x2cac   :  { %1950 = vmatpush1.bf16.msra.mxu0 %v1864_v59 }
0x2cad   :  { %1951 = vmatprep.subr.bf16.mxu0 %v2866_v1 }
0x2cb0   :  { %1952 = vmatpush1.bf16.msra.mxu0 %v1865_v34  ;;  %v2081_v34 = vld [vmem:[%s3688_s1 + $0x28] sm:$0xff] }
0x2cb1   :  { %1953 = vmatprep.subr.bf16.mxu0 %v2866_v1  ;;  %v1884_v1 = vpop.permute.xlu1 %1883 }
0x2cb2   :  { %vm1899_vm2 = vcmp.eq.s32.totalorder %v1875_v8, %v1884_v1  ;;  %vm1898_vm7 = vcmp.eq.s32.totalorder %v3521_v11, %v1884_v1 }
0x2cb3   :  { %v1911_v36 = vsel %vm1899_vm2, 1.0, %v2864_v0  ;;  %vm2202_vm2 = vcmask 7168  }
0x2cb4   :  { %v1921_v40 = vpack.c.bf16 %v1913_v35, %v1911_v36 }
0x2cb5   :  { %v1890_v42 = vpop.permute.xlu1 %1889 }
0x2cb6   :  { %vm1903_vm4 = vcmp.eq.s32.totalorder %v1875_v8, %v1890_v42  ;;  %vm1902_vm9 = vcmp.eq.s32.totalorder %v3521_v11, %v1890_v42 }
0x2cb7   :  { %v1915_v24 = vsel %vm1903_vm4, 1.0, %v2864_v0  ;;  %vm2302_vm11 = vmpackc.low %vm1904_vm10, %vm1902_vm9 }
0x2cb8   :  { %v1923_v41 = vpack.c.bf16 %v1917_v45, %v1915_v24 }
0x2cb9   :  { %v2147_v26 = vpop.permute.xlu1 %2146 }
0x2cbd   :  { %v2150_v27 = vpop.permute.xlu1 %2149 }
0x2d66   :  { %v1778_v2 = vpop.f32.mrb[32].mxu0 }
0x2d67   :  { %v1779_v3 = vadd.f32 %v2291_v57, %v1778_v2  ;;  %v2545_v4 = vpop.f32.mrb[33].mxu0 }
0x2d68   :  { %v1781_v5 = vpop.f32.mrb[34].mxu0 }
0x2d69   :  { %v1784_v7 = vmax.f32 %v1779_v3, 0.0  ;;  %v2546_v9 = vpop.f32.mrb[35].mxu0 }
0x2d6b   :  { %v1785_v10 = vpack.c.bf16 %v1784_v7, %v1784_v7 }
0x2d6d   :  { %2552 = vmatmul.mubr.msk.bf16.vlgmr.msra.gmra.mrb[48].mxu1 %vm79_vm1, %v1785_v10 }
0x2d6e   :  { %2559 = vmatprep.mubr.msk.bf16.mxu1 %vm2865_vm0, %v2864_v0  ;;  %2556 = vmatpush3.bf16.msra.mxu1 %v2001_v28 }
0x2d6f   :  { %2557 = vmatprep.subr.bf16.mxu1 %v2864_v0 }
0x2d72   :  { %2558 = vmatpush3.bf16.msra.mxu1 %v2002_v39 }
0x2e40   :  { %v1836_v29 = vpop.f32.mrb[48].mxu1 }
0x2e41   :  { %v1837_v25 = vadd.f32 %v2293_v37, %v1836_v29  ;;  %v2553_v46 = vpop.f32.mrb[49].mxu1 }
0x2e42   :  { %v1839_v30 = vpop.f32.mrb[50].mxu1 }
0x2e43   :  { %v1866_v31 = vpack.c.bf16 %v1837_v25, %v1837_v25  ;;  %v2554_v32 = vpop.f32.mrb[51].mxu1 }
0x2e45   :  { %v1935_v16 = vsel %vm892_vm6, %v1866_v31, 0  ;;  %vm2299_vm6 = vmpackc.low %vm1900_vm8, %vm1898_vm7 }
0x2e46   :  { %1954 = vmatpush1.bf16.msra.mxu0 %v1935_v16 }
0x2e49   :  { %2297 = vmatmul.mubr.msk.bf16.vlgmr.msra.gmra.mrb[36].mxu0 %vm3528_vm12, %v2869_v44  ;;  %vm2162_vm12 = vcmp.eq.s32.totalorder %v3521_v11, %v2150_v27  ;;  %v2187_v27 = vld [vmem:[%s3689_s2 + $0x18] sm:$0xff] }
0x2e4a   :  { %2298 = vmatprep.mubr.msk.bf16.mxu0 %vm1924_vm15, %v1921_v40 }
0x2e51   :  { %2300 = vmatmul.mubr.msk.bf16.gmra.mrb[40].mxu0 %vm2299_vm6, %v2869_v44 }
0x2e52   :  { %2301 = vmatprep.mubr.msk.bf16.mxu0 %vm1924_vm15, %v1923_v41 }
0x2e59   :  { %2303 = vmatmul.mubr.msk.bf16.gmra.mrb[44].mxu0 %vm2302_vm11, %v2869_v44 }
0x2f1c   :  { %v1971_v49 = vpop.f32.mrb[36].mxu0 }
0x2f1d   :  { %v1973_v13 = vpop.f32.mrb[37].mxu0 }
0x2f1e   :  { %v1974_v51 = vpop.f32.mrb[38].mxu0 }
0x2f1f   :  { %v1994_v52 = vpack.c.bf16 %v1974_v51, %v1971_v49  ;;  %v1976_v20 = vpop.f32.mrb[39].mxu0 }
0x2f21   :  { %2560 = vmatmul.mubr.msk.bf16.vlgmr.msra.gmra.mrb[52].mxu1 %vm79_vm1, %v1994_v52 }
0x2f22   :  { %2563 = vmatprep.mubr.msk.bf16.mxu1 %vm2865_vm0, %v2864_v0 }
0x2f24   :  { %v1979_v33 = vpop.f32.mrb[40].mxu0 }
0x2f25   :  { %v1981_v53 = vpop.f32.mrb[41].mxu0 }
0x2f26   :  { %v1982_v54 = vpop.f32.mrb[42].mxu0 }
0x2f27   :  { %v1995_v50 = vpack.c.bf16 %v1982_v54, %v1979_v33  ;;  %v1984_v55 = vpop.f32.mrb[43].mxu0 }
0x2f29   :  { %2564 = vmatmul.mubr.msk.bf16.gmra.mrb[56].mxu1 %vm79_vm1, %v1995_v50 }
0x2f2a   :  { %2567 = vmatprep.mubr.msk.bf16.mxu1 %vm2865_vm0, %v2864_v0  ;;  %vm2160_vm0 = vcmp.eq.s32.totalorder %v3521_v11, %v2144_v17 }
0x2f2c   :  { %v1987_v56 = vpop.f32.mrb[44].mxu0 }
0x2f2d   :  { %v1989_v58 = vpop.f32.mrb[45].mxu0 }
0x2f2e   :  { %v1990_v61 = vpop.f32.mrb[46].mxu0 }
0x2f2f   :  { %v1996_v62 = vpack.c.bf16 %v1990_v61, %v1987_v56  ;;  %v1992_v60 = vpop.f32.mrb[47].mxu0 }
0x2f31   :  { %2568 = vmatmul.mubr.msk.bf16.gmra.mrb[60].mxu1 %vm79_vm1, %v1996_v62  ;;  %vm2161_vm1 = vcmp.eq.s32.totalorder %v3521_v11, %v2147_v26 }
0x2ff4   :  { %v2053_v63 = vpop.f32.mrb[52].mxu1 }
0x2ff5   :  { %v3582_v59 = vadd.f32 %v2304_v14, %v2053_v63  ;;  %v2561_v57 = vpop.f32.mrb[53].mxu1 }
0x2ff6   :  { %v2056_v2 = vpop.f32.mrb[54].mxu1 }
0x2ff7   :  { %v3584_v3 = vadd.f32 %v2304_v14, %v2056_v2  ;;  %2082 = vmax.xlane.f32.xlu1 %v3582_v59  ;;  %v2562_v0 = vpop.f32.mrb[55].mxu1  ;;  %v2166_v51 = vsel %vm2160_vm0, %v3582_v59, 0.0 }
0x2ff9   :  { %2084 = vmax.xlane.f32.xlu0 %v3584_v3  ;;  %v2167_v20 = vsel %vm2161_vm1, %v3584_v3, 0.0 }
0x2ffc   :  { %v2061_v4 = vpop.f32.mrb[56].mxu1 }
0x2ffd   :  { %v3588_v5 = vadd.f32 %v2304_v14, %v2061_v4  ;;  %v2565_v6 = vpop.f32.mrb[57].mxu1  ;;  %v2184_v4 = vld [vmem:[%s3689_s2] sm:$0xff] }
0x2ffe   :  { %v2064_v7 = vpop.f32.mrb[58].mxu1 }
0x2fff   :  { %v3590_v9 = vadd.f32 %v2304_v14, %v2064_v7  ;;  %2086 = vmax.xlane.f32.xlu0 %v3588_v5  ;;  %v2566_v10 = vpop.f32.mrb[59].mxu1  ;;  %v2168_v53 = vsel %vm2162_vm12, %v3588_v5, 0.0 }
0x3001   :  { %2088 = vmax.xlane.f32.xlu1 %v3590_v9 }
0x3004   :  { %v2069_v19 = vpop.f32.mrb[60].mxu1 }
0x3005   :  { %v3594_v12 = vadd.f32 %v2304_v14, %v2069_v19  ;;  %v2569_v15 = vpop.f32.mrb[61].mxu1  ;;  %v2185_v19 = vld [vmem:[%s3689_s2 + $0x8] sm:$0xff] }
0x3006   :  { %v2072_v8 = vpop.f32.mrb[62].mxu1 }
0x3007   :  { %v3596_v21 = vadd.f32 %v2304_v14, %v2072_v8  ;;  %2090 = vmax.xlane.f32.xlu0 %v3594_v12  ;;  %v2570_v22 = vpop.f32.mrb[63].mxu1 }
0x3008   :  { %v2186_v22 = vld [vmem:[%s3689_s2 + $0x10] sm:$0xff] }
0x3009   :  { %2092 = vmax.xlane.f32.xlu1 %v3596_v21 }
0x301a   :  { %2155 = vperm.xlu1 %2662, %v2080_v23  }
0x301d   :  { %2152 = vperm.xlu0 %2661, %v2079_v38  }
0x3021   :  { %2158 = vperm.xlu0 %2661, %v2081_v34  }
0x3084   :  { %v3609_v28 = vpop.xlane.xlu1 %2082 }
0x3085   :  { %v2094_v37 = vsub.f32 %v3582_v59, %v3609_v28 }
0x3086   :  { %v3613_v1 = vpop.xlane.xlu0 %2084 }
0x3087   :  { %v2100_v29 = vmul.f32 1.442695, %v2094_v37  ;;  %v2095_v18 = vsub.f32 %v3584_v3, %v3613_v1 }
0x3089   :  { %2791 = vpow2.f32 %v2100_v29  ;;  %v2102_v25 = vmul.f32 1.442695, %v2095_v18 }
0x308b   :  { %2793 = vpow2.f32 %v2102_v25 }
0x308c   :  { %v3617_v46 = vpop.xlane.xlu0 %2086 }
0x308d   :  { %v2096_v30 = vsub.f32 %v3588_v5, %v3617_v46 }
0x308e   :  { %v3621_v31 = vpop.xlane.xlu1 %2088 }
0x308f   :  { %v2104_v32 = vmul.f32 1.442695, %v2096_v30  ;;  %v2097_v36 = vsub.f32 %v3590_v9, %v3621_v31 }
0x3091   :  { %2795 = vpow2.f32 %v2104_v32  ;;  %v2106_v35 = vmul.f32 1.442695, %v2097_v36 }
0x3093   :  { %v2792_v16 = vpop.eup %2791  ;;  %2797 = vpow2.f32 %v2106_v35 }
0x3094   :  { %v3625_v40 = vpop.xlane.xlu0 %2090  ;;  %2112 = vadd.xlane.f32.xlu1 %v2792_v16 }
0x3095   :  { %v2794_v42 = vpop.eup %2793  ;;  %v2098_v43 = vsub.f32 %v3594_v12, %v3625_v40 }
0x3096   :  { %2114 = vadd.xlane.f32.xlu0 %v2794_v42  ;;  %v3629_v44 = vpop.xlane.xlu1 %2092  ;;  %v2188_v42 = vld [vmem:[%s3689_s2 + $0x20] sm:$0xff] }
0x3097   :  { %v2108_v24 = vmul.f32 1.442695, %v2098_v43  ;;  %v2099_v45 = vsub.f32 %v3596_v21, %v3629_v44 }
0x3099   :  { %2799 = vpow2.f32 %v2108_v24  ;;  %v2110_v41 = vmul.f32 1.442695, %v2099_v45 }
0x309a   :  { %v2156_v52 = vpop.permute.xlu1 %2155 }
0x309b   :  { %v2796_v47 = vpop.eup %2795  ;;  %2801 = vpow2.f32 %v2110_v41  ;;  %vm2164_vm14 = vcmp.eq.s32.totalorder %v3521_v11, %v2156_v52 }
0x309c   :  { %2116 = vadd.xlane.f32.xlu0 %v2796_v47  ;;  %v2153_v13 = vpop.permute.xlu0 %2152  ;;  %v2170_v50 = vsel %vm2164_vm14, %v3594_v12, 0.0  ;;  %v2189_v47 = vld [vmem:[%s3689_s2 + $0x28] sm:$0xff]  ;;  %s2870_s2 = smov [#allocation5]  }
0x309d   :  { %v2798_v48 = vpop.eup %2797  ;;  %vm2163_vm13 = vcmp.eq.s32.totalorder %v3521_v11, %v2153_v13  ;;  %s2233_s19 = sshll.u32 %s2870_s2, 4  ;;  %s2234_s19 = int_to_ptr.vmem [resolvable:$true] %s2233_s19 }
0x309e   :  { %2118 = vadd.xlane.f32.xlu1 %v2798_v48  ;;  %v2169_v54 = vsel %vm2163_vm13, %v3590_v9, 0.0  ;;  %s2837_s24 = scalar_lea.vmem %s2234_s19, 16  ;;  %s2841_s3 = scalar_lea.vmem %s2234_s19, 32 }
0x309f   :  { %p2838_p8 = scmp.ne.s32.totalorder %s2234_s19, %s2837_s24  ;;  %p2842_p9 = scmp.lt.s32.totalorder %s2234_s19, %s2234_s19 }
0x30a0   :  { %v2159_v33 = vpop.permute.xlu0 %2158  ;;  %p2843_p10 = scmp.lt.s32.totalorder %s2841_s3, %s2837_s24 }
0x30a1   :  { %vm2165_vm15 = vcmp.eq.s32.totalorder %v3521_v11, %v2159_v33 }
0x30a2   :  { %v2171_v55 = vsel %vm2165_vm15, %v3596_v21, 0.0  ;;  %p2844_p11 = por %p2843_p10, %p2842_p9 }
0x30a3   :  { %v2800_v39 = vpop.eup %2799 }
0x30a4   :  { %2120 = vadd.xlane.f32.xlu0 %v2800_v39  ;;  %p2845_p12 = pnand %p2844_p11, %p2838_p8 }
0x30a5   :  { %v2802_v49 = vpop.eup %2801 }
0x30a6   :  { %2122 = vadd.xlane.f32.xlu1 %v2802_v49 }
0x30a8   :  { %2172 = vadd.xlane.f32.xlu0 %v2166_v51 }
0x30aa   :  { %2174 = vadd.xlane.f32.xlu1 %v2167_v20 }
0x30ac   :  { %2176 = vadd.xlane.f32.xlu0 %v2168_v53 }
0x30ae   :  { %2178 = vadd.xlane.f32.xlu1 %v2169_v54 }
0x30b0   :  { %2180 = vadd.xlane.f32.xlu0 %v2170_v50 }
0x30b2   :  { %2182 = vadd.xlane.f32.xlu1 %v2171_v55 }
0x3121   :  { %v2113_v56 = vpop.xlane.xlu1 %2112 }
0x3122   :  { %2803 = vlog2.f32 %v2113_v56 }
0x3123   :  { %v2115_v58 = vpop.xlane.xlu0 %2114 }
0x3124   :  { %2805 = vlog2.f32 %v2115_v58 }
0x3129   :  { %v2117_v61 = vpop.xlane.xlu0 %2116 }
0x312a   :  { %2807 = vlog2.f32 %v2117_v61 }
0x312b   :  { %v2119_v62 = vpop.xlane.xlu1 %2118 }
0x312c   :  { %2809 = vlog2.f32 %v2119_v62  ;;  %v2804_v60 = vpop.eup %2803 }
0x312d   :  { %v2125_v63 = vmul.f32 0.6931472, %v2804_v60 }
0x312e   :  { %v2806_v14 = vpop.eup %2805 }
0x312f   :  { %v2127_v11 = vmul.f32 0.6931472, %v2806_v14  ;;  %v2136_v3 = vadd.f32 %v2125_v63, %v3609_v28 }
0x3131   :  { %v2121_v59 = vpop.xlane.xlu0 %2120  ;;  %v2137_v9 = vadd.f32 %v2127_v11, %v3613_v1 }
0x3132   :  { %2811 = vlog2.f32 %v2121_v59 }
0x3133   :  { %v2123_v57 = vpop.xlane.xlu1 %2122 }
0x3134   :  { %v2808_v2 = vpop.eup %2807  ;;  %2813 = vlog2.f32 %v2123_v57 }
0x3135   :  { %v2129_v0 = vmul.f32 0.6931472, %v2808_v2  ;;  %v2173_v5 = vpop.xlane.xlu0 %2172 }
0x3136   :  { %v2810_v6 = vpop.eup %2809  ;;  %v2190_v7 = vsub.f32 %v2136_v3, %v2173_v5 }
0x3137   :  { %v2131_v10 = vmul.f32 0.6931472, %v2810_v6  ;;  %v2175_v12 = vpop.xlane.xlu1 %2174  ;;  %v2138_v15 = vadd.f32 %v2129_v0, %v3617_v46 }
0x3138   :  { %v2196_v8 = vmul.f32 %v2190_v7, %v2184_v4  ;;  %v2191_v21 = vsub.f32 %v2137_v9, %v2175_v12 }
0x3139   :  { %v2177_v23 = vpop.xlane.xlu0 %2176  ;;  %v2139_v38 = vadd.f32 %v2131_v10, %v3621_v31 }
0x313a   :  { %v2197_v34 = vmul.f32 %v2191_v21, %v2185_v19  ;;  %v2192_v26 = vsub.f32 %v2138_v15, %v2177_v23  ;;  %v2203_v37 = vsel %vm2202_vm2, %v2196_v8, 0.0 }
0x313b   :  { %v2179_v17 = vpop.xlane.xlu1 %2178 }
0x313c   :  { %v2812_v28 = vpop.eup %2811  ;;  %v2204_v1 = vsel %vm2202_vm2, %v2197_v34, 0.0  ;;  %v2198_v29 = vmul.f32 %v2192_v26, %v2186_v22  ;;  %v2193_v18 = vsub.f32 %v2139_v38, %v2179_v17 }
0x313d   :  { %v2133_v25 = vmul.f32 0.6931472, %v2812_v28  ;;  %v2205_v46 = vadd.f32 %v2204_v1, %v2203_v37  ;;  %v2181_v43 = vpop.xlane.xlu0 %2180 }
0x313e   :  { %v2814_v30 = vpop.eup %2813  ;;  %v2206_v32 = vsel %vm2202_vm2, %v2198_v29, 0.0  ;;  %v2199_v31 = vmul.f32 %v2193_v18, %v2187_v27 }
0x313f   :  { %v2135_v36 = vmul.f32 0.6931472, %v2814_v30  ;;  %v2140_v35 = vadd.f32 %v2133_v25, %v3625_v40  ;;  %v2207_v16 = vadd.f32 %v2206_v32, %v2205_v46  ;;  %v2183_v48 = vpop.xlane.xlu1 %2182 }
0x3140   :  { %v2208_v24 = vsel %vm2202_vm2, %v2199_v31, 0.0 }
0x3141   :  { %v2194_v45 = vsub.f32 %v2140_v35, %v2181_v43  ;;  %v2141_v41 = vadd.f32 %v2135_v36, %v3629_v44  ;;  %v2209_v13 = vadd.f32 %v2208_v24, %v2207_v16 }
0x3143   :  { %v2200_v39 = vmul.f32 %v2194_v45, %v2188_v42  ;;  %v2195_v49 = vsub.f32 %v2141_v41, %v2183_v48 }
0x3145   :  { %v2210_v40 = vsel %vm2202_vm2, %v2200_v39, 0.0  ;;  %v2201_v51 = vmul.f32 %v2195_v49, %v2189_v47 }
0x3146   :  { %v2211_v52 = vadd.f32 %v2210_v40, %v2209_v13 }
0x3147   :  { %v2212_v20 = vsel %vm2202_vm2, %v2201_v51, 0.0 }
0x3148   :  { %v2213_v33 = vadd.f32 %v2212_v20, %v2211_v52 }
0x314a   :  { %2214 = vadd.xlane.f32.xlu0 %v2213_v33 }
0x31d7   :  { %v2215_v53 = vpop.xlane.xlu0 %2214 }
0x31d8   :  { %v2216_v54 = vrot.slane %v2215_v53, 4 }
0x31da   :  { %v2217_v50 = vadd.f32 %v2216_v54, %v2215_v53 }
0x31dc   :  { %v2218_v44 = vrot.slane %v2217_v50, 2 }
0x31de   :  { %v2219_v55 = vadd.f32 %v2218_v44, %v2217_v50 }
0x31e0   :  { %v2220_v56 = vrot.slane %v2219_v55, 1 }
0x31e2   :  { %v2221_v58 = vadd.f32 %v2220_v56, %v2219_v55 }
0x31e4   :  { %2571 = vpush %v2221_v58 }
0x3215   :  { %s2572_s11 = spop %2571 }
0x3216   :  { %v2223_v61 = vstv %s2572_s11 }
0x3217   :  { %v2224_v62 = vmul.f32 0.5, %v2223_v61 }
0x3219   :  { %2226 = vst.msk [vmem:[#allocation5] sm:$0x1] %vm2225_vm3, %v2224_v62 }
0x321a   :  { %2848 = shalt.err (!%p2845_p12)
}
0x321b   :  { %s2849_s21 = scalar_lea.hbm %s3702_s15, 16 }
0x321c   :  { %p2850_p13 = scmp.ne.s32.totalorder %s3702_s15, %s2849_s21  ;;  %p2853_p0 = scmp.lt.u32.totalorder %s2849_s21, %s3702_s15 }
0x321e   :  { %p2855_p1 = pnand %p2853_p0, %p2850_p13 }
0x3220   :  { %2858 = shalt.err (!%p2855_p1)
}
0x3221   :  { %2236 = dma.vmem_to_hbm [thread:$0]  %s2234_s19, 16, %s3702_s15, [#allocation4]  }
0x3222   :  { %2861 = dma.done.wait [#allocation4], 16  }
0x3223   :  { %2862 = vsyncadd [#allocation4], 4294967280 }
0x3224   :  { %2240 = vsyncpa [#allocation3], 1 }
0x3225   :  { %2241 = vsyncpa [#allocation4], 1 }

</bundles_post_ra>
